<compile_context>
chip_gen: v7x
topology: tpu7x:2x2x1
jax: 0.10.0
libtpu: 0.0.40
codegen_flags: <defaults>
</compile_context>

<pallas_src>
import functools

import jax
import jax.numpy as jnp
from jax import lax
from jax.experimental import pallas as pl
from jax.experimental.pallas import tpu as pltpu

_LANE = 128
_MiB = 1024 * 1024


def _log_sigmoid(x):
    # Numerically stable, single branch: log(sigmoid(x)) = -softplus(-x)
    return -(jnp.maximum(-x, 0.0) + jnp.log1p(jnp.exp(-jnp.abs(x))))


def _round_up(x, m):
    return ((x + m - 1) // m) * m


# --------------------------------------------------------------------------
# Fast path: both embedding tables resident in VMEM, gathers are VMEM slices.
# --------------------------------------------------------------------------
def _sgns_resident_kernel(c_idx, t_idx, n_idx,        # scalar prefetch (SMEM)
                          emb_v_ref, emb_u_ref,       # full tables in VMEM
                          out_ref,                    # (1, 8, 128) per-tile partial
                          cbuf, tbuf, nsum,           # VMEM scratch (tb, Dp)
                          *, tb, k, b_true):
    i = pl.program_id(0)
    base = i * tb

    def gather_row(r, carry):
        row = base + r
        cbuf[pl.ds(r, 1), :] = emb_v_ref[pl.ds(c_idx[row], 1), :]
        tbuf[pl.ds(r, 1), :] = emb_u_ref[pl.ds(t_idx[row], 1), :]
        # K-first reduction of the negatives for this row (K is small, static).
        nacc = emb_u_ref[pl.ds(n_idx[row * k], 1), :].astype(jnp.float32)
        for kk in range(1, k):
            nacc = nacc + emb_u_ref[pl.ds(n_idx[row * k + kk], 1), :].astype(
                jnp.float32)
        nsum[pl.ds(r, 1), :] = nacc
        return carry

    # tb is a multiple of 8, so unroll=8 always divides the trip count.
    lax.fori_loop(0, tb, gather_row, 0, unroll=8)

    center = cbuf[...].astype(jnp.float32)             # (tb, Dp)
    target = tbuf[...].astype(jnp.float32)             # (tb, Dp)

    pos_score = jnp.sum(target * center, axis=-1, keepdims=True)       # (tb,1)
    neg_score = -jnp.sum(nsum[...] * center, axis=-1, keepdims=True)   # (tb,1)

    los = _log_sigmoid(pos_score) + _log_sigmoid(neg_score)            # (tb,1)

    # Mask rows that only exist because B was padded up to a multiple of tb.
    row_ids = base + lax.broadcasted_iota(jnp.int32, (tb, 1), 0)
    los = jnp.where(row_ids < b_true, los, 0.0)

    partial = jnp.sum(los)
    # Lane/sublane-dense store; the wrapper reads element [i, 0, 0].
    out_ref[...] = jnp.full((1, 8, _LANE), partial, jnp.float32)


# --------------------------------------------------------------------------
# Slow path: tables stay in HBM, rows gathered with double-buffered DMAs.
# --------------------------------------------------------------------------
def _sgns_dma_kernel(c_idx, t_idx, n_idx,              # scalar prefetch (SMEM)
                     emb_v_hbm, emb_u_hbm,             # tables left in HBM
                     out_ref,                          # (1, 8, 128) per-tile partial
                     cbuf, tbuf, nbuf, sems,           # scratch
                     *, tb, k, b_true):
    i = pl.program_id(0)
    nt = pl.num_programs(0)
    slot = i % 2

    def issue_tile(t, s):
        """Start all gather DMAs for batch tile `t` into buffer slot `s`."""
        base = t * tb

        def issue_row(r, carry):
            row = base + r
            pltpu.make_async_copy(
                emb_v_hbm.at[pl.ds(c_idx[row], 1), :],
                cbuf.at[s, pl.ds(r, 1), :],
                sems.at[0, s]).start()
            pltpu.make_async_copy(
                emb_u_hbm.at[pl.ds(t_idx[row], 1), :],
                tbuf.at[s, pl.ds(r, 1), :],
                sems.at[1, s]).start()
            for kk in range(k):                        # K is small & static
                pltpu.make_async_copy(
                    emb_u_hbm.at[pl.ds(n_idx[row * k + kk], 1), :],
                    nbuf.at[s, pl.ds(kk * tb + r, 1), :],
                    sems.at[2, s]).start()
            return carry

        # Cap the unroll: DMA issue rate is bounded by the misc slot anyway.
        lax.fori_loop(0, tb, issue_row, 0, unroll=min(8, tb))

    # First grid step: kick off tile 0's gathers.
    @pl.when(i == 0)
    def _():
        issue_tile(0, 0)

    # Prefetch the next tile's rows into the other slot (overlaps compute).
    @pl.when(i + 1 < nt)
    def _():
        issue_tile(i + 1, 1 - slot)

    # ONE wait per (stream, slot): DMA semaphores count bytes, so a dummy
    # descriptor shaped like the whole slot slab waits for all tb (or K*tb)
    # row copies at once instead of tb*(2+K) serialized waits.
    pltpu.make_async_copy(cbuf.at[slot], cbuf.at[slot], sems.at[0, slot]).wait()
    pltpu.make_async_copy(tbuf.at[slot], tbuf.at[slot], sems.at[1, slot]).wait()
    pltpu.make_async_copy(nbuf.at[slot], nbuf.at[slot], sems.at[2, slot]).wait()

    # ---- compute: cast to f32 in-kernel (tables may be bf16) ----
    center = cbuf[slot].astype(jnp.float32)            # (tb, Dp)
    target = tbuf[slot].astype(jnp.float32)            # (tb, Dp)
    negs = nbuf[slot].astype(jnp.float32)              # (k*tb, Dp)

    # K-first reduction (tb is a multiple of 8 -> slices are sublane-aligned).
    neg_sum = negs[0:tb]
    for kk in range(1, k):
        neg_sum = neg_sum + negs[kk * tb:(kk + 1) * tb]

    pos_score = jnp.sum(target * center, axis=-1, keepdims=True)       # (tb,1)
    neg_score = -jnp.sum(neg_sum * center, axis=-1, keepdims=True)     # (tb,1)

    los = _log_sigmoid(pos_score) + _log_sigmoid(neg_score)            # (tb,1)

    row_ids = i * tb + lax.broadcasted_iota(jnp.int32, (tb, 1), 0)
    los = jnp.where(row_ids < b_true, los, 0.0)

    partial = jnp.sum(los)
    out_ref[...] = jnp.full((1, 8, _LANE), partial, jnp.float32)


# --------------------------------------------------------------------------
# Wrapper
# --------------------------------------------------------------------------
def sgns_forward(emb_v, emb_u, center_words, target_words, negative_words,
                 *, tile_b=256, vmem_budget_bytes=None, force_path=None):
    """Pallas SGNS forward pass. Returns the scalar loss.

    tile_b: batch rows per grid step (rounded to a multiple of 8, clamped to
    the batch).  The table-resident fast path is taken when
    2*(emb_v + emb_u) table bytes + tile scratch fits ~75% of physical VMEM
    (128 MiB on v5e/v6e, 64 MiB on v7x); otherwise the HBM-gather fallback is
    used and tile_b is shrunk so the double-buffered gather slabs
    (2*tile_b*(2+K)*Dp*itemsize) fit the budget.
    force_path: None | "resident" | "dma".
    """
    B = center_words.shape[0]
    K = negative_words.shape[1]
    V, D = emb_v.shape

    # Lane-pad the embedding dim so gathered rows / VPU ops are lane-dense.
    # (Zero padding does not change any dot product.  Real workloads should
    # supply a 128-aligned D; padding huge tables here costs one table copy.)
    Dp = _round_up(D, _LANE)
    if Dp != D:
        emb_v = jnp.pad(emb_v, ((0, 0), (0, Dp - D)))
        emb_u = jnp.pad(emb_u, ((0, 0), (0, Dp - D)))

    if vmem_budget_bytes is None:
        try:
            phys = int(pltpu.get_tpu_info().vmem_capacity_bytes)
        except Exception:
            phys = 64 * _MiB          # v7x (smallest) as the safe fallback
        vmem_budget_bytes = phys * 3 // 4

    isz_v = emb_v.dtype.itemsize
    isz_u = emb_u.dtype.itemsize

    tb = max(8, _round_up(min(tile_b, B), 8))

    # Pipeline keeps 2 buffers per input -> 2x each table for the fast path.
    table_bytes = 2 * V * Dp * (isz_v + isz_u)

    def fast_scratch(t):
        return t * Dp * (isz_v + isz_u + 4)

    def slow_scratch(t):
        return 2 * t * Dp * (isz_v + (1 + K) * isz_u)

    use_fast = table_bytes + fast_scratch(tb) + 4 * _MiB <= vmem_budget_bytes
    if force_path == "resident":
        use_fast = True
    elif force_path == "dma":
        use_fast = False

    if not use_fast:
        # Shrink the tile until the double-buffered gather slabs fit.
        while tb > 8 and slow_scratch(tb) + 4 * _MiB > vmem_budget_bytes:
            tb //= 2
        tb = max(8, _round_up(tb, 8))

    nt = pl.cdiv(B, tb)
    pad = nt * tb - B
    # Padded index entries gather row 0 (valid) and are masked out of the sum.
    c_idx = jnp.pad(center_words.reshape(B).astype(jnp.int32), (0, pad))
    t_idx = jnp.pad(target_words.reshape(B).astype(jnp.int32), (0, pad))
    # Flatten negatives to 1-D before SMEM (avoids (B,128) SMEM padding blowup).
    n_idx = jnp.pad(negative_words.astype(jnp.int32).reshape(B * K),
                    (0, pad * K))

    out_shape = jax.ShapeDtypeStruct((nt, 8, _LANE), jnp.float32)
    out_spec = pl.BlockSpec((1, 8, _LANE), lambda i, *_: (i, 0, 0))

    if use_fast:
        kernel = functools.partial(_sgns_resident_kernel, tb=tb, k=K, b_true=B)
        need = table_bytes + fast_scratch(tb)
        grid_spec = pltpu.PrefetchScalarGridSpec(
            num_scalar_prefetch=3,
            grid=(nt,),
            in_specs=[
                pl.BlockSpec((V, Dp), lambda i, *_: (0, 0)),   # emb_v resident
                pl.BlockSpec((V, Dp), lambda i, *_: (0, 0)),   # emb_u resident
            ],
            out_specs=out_spec,
            scratch_shapes=[
                pltpu.VMEM((tb, Dp), emb_v.dtype),     # gathered center rows
                pltpu.VMEM((tb, Dp), emb_u.dtype),     # gathered target rows
                pltpu.VMEM((tb, Dp), jnp.float32),     # per-row negative sums
            ],
        )
        # Tiles are independent (no cross-iteration state) -> safe to mark the
        # batch axis parallel; uses both TensorCores on v7x.
        params = pltpu.CompilerParams(
            dimension_semantics=("parallel",),
            vmem_limit_bytes=int(max(32 * _MiB, need + 8 * _MiB)),
        )
    else:
        kernel = functools.partial(_sgns_dma_kernel, tb=tb, k=K, b_true=B)
        need = slow_scratch(tb)
        grid_spec = pltpu.PrefetchScalarGridSpec(
            num_scalar_prefetch=3,
            grid=(nt,),
            in_specs=[
                pl.BlockSpec(memory_space=pl.ANY),     # emb_v stays in HBM
                pl.BlockSpec(memory_space=pl.ANY),     # emb_u stays in HBM
            ],
            out_specs=out_spec,
            scratch_shapes=[
                pltpu.VMEM((2, tb, Dp), emb_v.dtype),       # center rows (2 slots)
                pltpu.VMEM((2, tb, Dp), emb_u.dtype),       # target rows (2 slots)
                pltpu.VMEM((2, K * tb, Dp), emb_u.dtype),   # negative rows (2 slots)
                pltpu.SemaphoreType.DMA((3, 2)),            # (stream, slot)
            ],
        )
        # Double-buffering prefetches tile i+1 at step i -> cross-iteration
        # dependence, so this axis stays "arbitrary".
        params = pltpu.CompilerParams(
            dimension_semantics=("arbitrary",),
            vmem_limit_bytes=int(max(32 * _MiB, need + 8 * _MiB)),
        )

    partials = pl.pallas_call(
        kernel,
        out_shape=out_shape,
        grid_spec=grid_spec,
        compiler_params=params,
    )(c_idx, t_idx, n_idx, emb_v, emb_u)

    # Per-tile partial sums live at [i, 0, 0]; mean divisor is the TRUE B.
    return -jnp.sum(partials[:, 0, 0]) / jnp.float32(B)


def sgns_reference(emb_v, emb_u, center_words, target_words, negative_words):
    c = jnp.take(emb_v, center_words[:, 0], axis=0).astype(jnp.float32)
    t = jnp.take(emb_u, target_words[:, 0], axis=0).astype(jnp.float32)
    n = -jnp.take(emb_u, negative_words, axis=0).astype(jnp.float32)
    pos = jnp.sum(t * c, axis=-1, keepdims=True)
    neg = jnp.sum(jnp.sum(n * c[:, None, :], axis=-1), axis=-1, keepdims=True)
    los = jax.nn.log_sigmoid(pos) + jax.nn.log_sigmoid(neg)
    return -jnp.mean(los)


if __name__ == "__main__":
    vocab_size = 50
    projection_dim = 32
    B, K = 20, 4          # B not a multiple of tile_b -> exercises tiling + mask

    key = jax.random.PRNGKey(0)
    k_v, k_u, k_c, k_t, k_n = jax.random.split(key, 5)

    init_range = (2.0 / (vocab_size + projection_dim)) ** 0.5
    emb_v = jax.random.uniform(k_v, (vocab_size, projection_dim),
                               jnp.float32, -init_range, init_range)
    emb_u = jax.random.uniform(k_u, (vocab_size, projection_dim),
                               jnp.float32, -init_range, init_range)

    center_words = jax.random.randint(k_c, (B, 1), 0, vocab_size)
    target_words = jax.random.randint(k_t, (B, 1), 0, vocab_size)
    negative_words = jax.random.randint(k_n, (B, K), 0, vocab_size)

    ref = sgns_reference(emb_v, emb_u, center_words, target_words,
                         negative_words)

    # Fast (VMEM-resident-table) path -- the default for tables this small.
    loss_fast = sgns_forward(emb_v, emb_u, center_words, target_words,
                             negative_words, tile_b=8)
    jax.block_until_ready(loss_fast)
    assert jnp.allclose(loss_fast, ref, atol=1e-5, rtol=1e-5), (loss_fast, ref)

    # HBM-gather (manual DMA) fallback path -- forced, to exercise it too.
    loss_dma = sgns_forward(emb_v, emb_u, center_words, target_words,
                            negative_words, tile_b=8, force_path="dma")
    jax.block_until_ready(loss_dma)
    assert jnp.allclose(loss_dma, ref, atol=1e-5, rtol=1e-5), (loss_dma, ref)

    print("KERNEL_OK")
</pallas_src>

<mosaic_0001>
module attributes {stable_mosaic.version = 11 : i64} {
  func.func @_sgns_resident_kernel(%arg0: i32, %arg1: memref<24xi32, #tpu.memory_space<smem>>, %arg2: memref<24xi32, #tpu.memory_space<smem>>, %arg3: memref<96xi32, #tpu.memory_space<smem>>, %arg4: memref<50x128xf32, #tpu.memory_space<vmem>>, %arg5: memref<50x128xf32, #tpu.memory_space<vmem>>, %arg6: memref<1x8x128xf32, #tpu.memory_space<vmem>>, %arg7: memref<8x128xf32, #tpu.memory_space<vmem>>, %arg8: memref<8x128xf32, #tpu.memory_space<vmem>>, %arg9: memref<8x128xf32, #tpu.memory_space<vmem>>) attributes {dimension_semantics = [#tpu.dimension_semantics<parallel>], iteration_bounds = array<i64: 3>, scalar_prefetch = 3 : i64, scratch_operands = 3 : i64, tpu.core_type = #tpu.core_type<tc>, window_params = [{pipeline_mode = #tpu.pipeline_mode<synchronous>, transform_indices = @transform_0, window_bounds = array<i64: 50, 128>}, {pipeline_mode = #tpu.pipeline_mode<synchronous>, transform_indices = @transform_1, window_bounds = array<i64: 50, 128>}, {transform_indices = @transform_2, window_bounds = array<i64: 1, 8, 128>}]} {
    %c8_i32 = arith.constant 8 : i32
    %0 = arith.muli %arg0, %c8_i32 : i32
    %c0_i32 = arith.constant 0 : i32
    %1 = arith.addi %0, %c0_i32 : i32
    %2 = arith.index_cast %1 : i32 to index
    %3 = memref.load %arg1[%2] : memref<24xi32, #tpu.memory_space<smem>>
    %4 = arith.index_cast %3 : i32 to index
    %c0 = arith.constant 0 : index
    %5 = vector.load %arg4[%4, %c0] : memref<50x128xf32, #tpu.memory_space<vmem>>, vector<1x128xf32>
    %6 = arith.index_cast %c0_i32 : i32 to index
    %c0_0 = arith.constant 0 : index
    %7 = vector.load %arg7[%6, %c0_0] : memref<8x128xf32, #tpu.memory_space<vmem>>, vector<1x128xf32>
    tpu.vector_store %arg7[%6, %c0_0], %5 {strides = array<i32>} : memref<8x128xf32, #tpu.memory_space<vmem>>, vector<1x128xf32>,
    %8 = arith.index_cast %1 : i32 to index
    %9 = memref.load %arg2[%8] : memref<24xi32, #tpu.memory_space<smem>>
    %10 = arith.index_cast %9 : i32 to index
    %c0_1 = arith.constant 0 : index
    %11 = vector.load %arg5[%10, %c0_1] : memref<50x128xf32, #tpu.memory_space<vmem>>, vector<1x128xf32>
    %12 = arith.index_cast %c0_i32 : i32 to index
    %c0_2 = arith.constant 0 : index
    %13 = vector.load %arg8[%12, %c0_2] : memref<8x128xf32, #tpu.memory_space<vmem>>, vector<1x128xf32>
    tpu.vector_store %arg8[%12, %c0_2], %11 {strides = array<i32>} : memref<8x128xf32, #tpu.memory_space<vmem>>, vector<1x128xf32>,
    %c4_i32 = arith.constant 4 : i32
    %14 = arith.muli %1, %c4_i32 : i32
    %15 = arith.index_cast %14 : i32 to index
    %16 = memref.load %arg3[%15] : memref<96xi32, #tpu.memory_space<smem>>
    %17 = arith.index_cast %16 : i32 to index
    %c0_3 = arith.constant 0 : index
    %18 = vector.load %arg5[%17, %c0_3] : memref<50x128xf32, #tpu.memory_space<vmem>>, vector<1x128xf32>
    %c4_i32_4 = arith.constant 4 : i32
    %19 = arith.muli %1, %c4_i32_4 : i32
    %c1_i32 = arith.constant 1 : i32
    %20 = arith.addi %19, %c1_i32 : i32
    %21 = arith.index_cast %20 : i32 to index
    %22 = memref.load %arg3[%21] : memref<96xi32, #tpu.memory_space<smem>>
    %23 = arith.index_cast %22 : i32 to index
    %c0_5 = arith.constant 0 : index
    %24 = vector.load %arg5[%23, %c0_5] : memref<50x128xf32, #tpu.memory_space<vmem>>, vector<1x128xf32>
    %25 = arith.addf %18, %24 : vector<1x128xf32>
    %c4_i32_6 = arith.constant 4 : i32
    %26 = arith.muli %1, %c4_i32_6 : i32
    %c2_i32 = arith.constant 2 : i32
    %27 = arith.addi %26, %c2_i32 : i32
    %28 = arith.index_cast %27 : i32 to index
    %29 = memref.load %arg3[%28] : memref<96xi32, #tpu.memory_space<smem>>
    %30 = arith.index_cast %29 : i32 to index
    %c0_7 = arith.constant 0 : index
    %31 = vector.load %arg5[%30, %c0_7] : memref<50x128xf32, #tpu.memory_space<vmem>>, vector<1x128xf32>
    %32 = arith.addf %25, %31 : vector<1x128xf32>
    %c4_i32_8 = arith.constant 4 : i32
    %33 = arith.muli %1, %c4_i32_8 : i32
    %c3_i32 = arith.constant 3 : i32
    %34 = arith.addi %33, %c3_i32 : i32
    %35 = arith.index_cast %34 : i32 to index
    %36 = memref.load %arg3[%35] : memref<96xi32, #tpu.memory_space<smem>>
    %37 = arith.index_cast %36 : i32 to index
    %c0_9 = arith.constant 0 : index
    %38 = vector.load %arg5[%37, %c0_9] : memref<50x128xf32, #tpu.memory_space<vmem>>, vector<1x128xf32>
    %39 = arith.addf %32, %38 : vector<1x128xf32>
    %40 = arith.index_cast %c0_i32 : i32 to index
    %c0_10 = arith.constant 0 : index
    %41 = vector.load %arg9[%40, %c0_10] : memref<8x128xf32, #tpu.memory_space<vmem>>, vector<1x128xf32>
    tpu.vector_store %arg9[%40, %c0_10], %39 {strides = array<i32>} : memref<8x128xf32, #tpu.memory_space<vmem>>, vector<1x128xf32>,
    %c1_i32_11 = arith.constant 1 : i32
    %42 = arith.addi %0, %c1_i32_11 : i32
    %43 = arith.index_cast %42 : i32 to index
    %44 = memref.load %arg1[%43] : memref<24xi32, #tpu.memory_space<smem>>
    %45 = arith.index_cast %44 : i32 to index
    %c0_12 = arith.constant 0 : index
    %46 = vector.load %arg4[%45, %c0_12] : memref<50x128xf32, #tpu.memory_space<vmem>>, vector<1x128xf32>
    %47 = arith.index_cast %c1_i32_11 : i32 to index
    %c0_13 = arith.constant 0 : index
    %48 = vector.load %arg7[%47, %c0_13] : memref<8x128xf32, #tpu.memory_space<vmem>>, vector<1x128xf32>
    tpu.vector_store %arg7[%47, %c0_13], %46 {strides = array<i32>} : memref<8x128xf32, #tpu.memory_space<vmem>>, vector<1x128xf32>,
    %49 = arith.index_cast %42 : i32 to index
    %50 = memref.load %arg2[%49] : memref<24xi32, #tpu.memory_space<smem>>
    %51 = arith.index_cast %50 : i32 to index
    %c0_14 = arith.constant 0 : index
    %52 = vector.load %arg5[%51, %c0_14] : memref<50x128xf32, #tpu.memory_space<vmem>>, vector<1x128xf32>
    %53 = arith.index_cast %c1_i32_11 : i32 to index
    %c0_15 = arith.constant 0 : index
    %54 = vector.load %arg8[%53, %c0_15] : memref<8x128xf32, #tpu.memory_space<vmem>>, vector<1x128xf32>
    tpu.vector_store %arg8[%53, %c0_15], %52 {strides = array<i32>} : memref<8x128xf32, #tpu.memory_space<vmem>>, vector<1x128xf32>,
    %c4_i32_16 = arith.constant 4 : i32
    %55 = arith.muli %42, %c4_i32_16 : i32
    %56 = arith.index_cast %55 : i32 to index
    %57 = memref.load %arg3[%56] : memref<96xi32, #tpu.memory_space<smem>>
    %58 = arith.index_cast %57 : i32 to index
    %c0_17 = arith.constant 0 : index
    %59 = vector.load %arg5[%58, %c0_17] : memref<50x128xf32, #tpu.memory_space<vmem>>, vector<1x128xf32>
    %c4_i32_18 = arith.constant 4 : i32
    %60 = arith.muli %42, %c4_i32_18 : i32
    %c1_i32_19 = arith.constant 1 : i32
    %61 = arith.addi %60, %c1_i32_19 : i32
    %62 = arith.index_cast %61 : i32 to index
    %63 = memref.load %arg3[%62] : memref<96xi32, #tpu.memory_space<smem>>
    %64 = arith.index_cast %63 : i32 to index
    %c0_20 = arith.constant 0 : index
    %65 = vector.load %arg5[%64, %c0_20] : memref<50x128xf32, #tpu.memory_space<vmem>>, vector<1x128xf32>
    %66 = arith.addf %59, %65 : vector<1x128xf32>
    %c4_i32_21 = arith.constant 4 : i32
    %67 = arith.muli %42, %c4_i32_21 : i32
    %c2_i32_22 = arith.constant 2 : i32
    %68 = arith.addi %67, %c2_i32_22 : i32
    %69 = arith.index_cast %68 : i32 to index
    %70 = memref.load %arg3[%69] : memref<96xi32, #tpu.memory_space<smem>>
    %71 = arith.index_cast %70 : i32 to index
    %c0_23 = arith.constant 0 : index
    %72 = vector.load %arg5[%71, %c0_23] : memref<50x128xf32, #tpu.memory_space<vmem>>, vector<1x128xf32>
    %73 = arith.addf %66, %72 : vector<1x128xf32>
    %c4_i32_24 = arith.constant 4 : i32
    %74 = arith.muli %42, %c4_i32_24 : i32
    %c3_i32_25 = arith.constant 3 : i32
    %75 = arith.addi %74, %c3_i32_25 : i32
    %76 = arith.index_cast %75 : i32 to index
    %77 = memref.load %arg3[%76] : memref<96xi32, #tpu.memory_space<smem>>
    %78 = arith.index_cast %77 : i32 to index
    %c0_26 = arith.constant 0 : index
    %79 = vector.load %arg5[%78, %c0_26] : memref<50x128xf32, #tpu.memory_space<vmem>>, vector<1x128xf32>
    %80 = arith.addf %73, %79 : vector<1x128xf32>
    %81 = arith.index_cast %c1_i32_11 : i32 to index
    %c0_27 = arith.constant 0 : index
    %82 = vector.load %arg9[%81, %c0_27] : memref<8x128xf32, #tpu.memory_space<vmem>>, vector<1x128xf32>
    tpu.vector_store %arg9[%81, %c0_27], %80 {strides = array<i32>} : memref<8x128xf32, #tpu.memory_space<vmem>>, vector<1x128xf32>,
    %c2_i32_28 = arith.constant 2 : i32
    %83 = arith.addi %0, %c2_i32_28 : i32
    %84 = arith.index_cast %83 : i32 to index
    %85 = memref.load %arg1[%84] : memref<24xi32, #tpu.memory_space<smem>>
    %86 = arith.index_cast %85 : i32 to index
    %c0_29 = arith.constant 0 : index
    %87 = vector.load %arg4[%86, %c0_29] : memref<50x128xf32, #tpu.memory_space<vmem>>, vector<1x128xf32>
    %88 = arith.index_cast %c2_i32_28 : i32 to index
    %c0_30 = arith.constant 0 : index
    %89 = vector.load %arg7[%88, %c0_30] : memref<8x128xf32, #tpu.memory_space<vmem>>, vector<1x128xf32>
    tpu.vector_store %arg7[%88, %c0_30], %87 {strides = array<i32>} : memref<8x128xf32, #tpu.memory_space<vmem>>, vector<1x128xf32>,
    %90 = arith.index_cast %83 : i32 to index
    %91 = memref.load %arg2[%90] : memref<24xi32, #tpu.memory_space<smem>>
    %92 = arith.index_cast %91 : i32 to index
    %c0_31 = arith.constant 0 : index
    %93 = vector.load %arg5[%92, %c0_31] : memref<50x128xf32, #tpu.memory_space<vmem>>, vector<1x128xf32>
    %94 = arith.index_cast %c2_i32_28 : i32 to index
    %c0_32 = arith.constant 0 : index
    %95 = vector.load %arg8[%94, %c0_32] : memref<8x128xf32, #tpu.memory_space<vmem>>, vector<1x128xf32>
    tpu.vector_store %arg8[%94, %c0_32], %93 {strides = array<i32>} : memref<8x128xf32, #tpu.memory_space<vmem>>, vector<1x128xf32>,
    %c4_i32_33 = arith.constant 4 : i32
    %96 = arith.muli %83, %c4_i32_33 : i32
    %97 = arith.index_cast %96 : i32 to index
    %98 = memref.load %arg3[%97] : memref<96xi32, #tpu.memory_space<smem>>
    %99 = arith.index_cast %98 : i32 to index
    %c0_34 = arith.constant 0 : index
    %100 = vector.load %arg5[%99, %c0_34] : memref<50x128xf32, #tpu.memory_space<vmem>>, vector<1x128xf32>
    %c4_i32_35 = arith.constant 4 : i32
    %101 = arith.muli %83, %c4_i32_35 : i32
    %c1_i32_36 = arith.constant 1 : i32
    %102 = arith.addi %101, %c1_i32_36 : i32
    %103 = arith.index_cast %102 : i32 to index
    %104 = memref.load %arg3[%103] : memref<96xi32, #tpu.memory_space<smem>>
    %105 = arith.index_cast %104 : i32 to index
    %c0_37 = arith.constant 0 : index
    %106 = vector.load %arg5[%105, %c0_37] : memref<50x128xf32, #tpu.memory_space<vmem>>, vector<1x128xf32>
    %107 = arith.addf %100, %106 : vector<1x128xf32>
    %c4_i32_38 = arith.constant 4 : i32
    %108 = arith.muli %83, %c4_i32_38 : i32
    %c2_i32_39 = arith.constant 2 : i32
    %109 = arith.addi %108, %c2_i32_39 : i32
    %110 = arith.index_cast %109 : i32 to index
    %111 = memref.load %arg3[%110] : memref<96xi32, #tpu.memory_space<smem>>
    %112 = arith.index_cast %111 : i32 to index
    %c0_40 = arith.constant 0 : index
    %113 = vector.load %arg5[%112, %c0_40] : memref<50x128xf32, #tpu.memory_space<vmem>>, vector<1x128xf32>
    %114 = arith.addf %107, %113 : vector<1x128xf32>
    %c4_i32_41 = arith.constant 4 : i32
    %115 = arith.muli %83, %c4_i32_41 : i32
    %c3_i32_42 = arith.constant 3 : i32
    %116 = arith.addi %115, %c3_i32_42 : i32
    %117 = arith.index_cast %116 : i32 to index
    %118 = memref.load %arg3[%117] : memref<96xi32, #tpu.memory_space<smem>>
    %119 = arith.index_cast %118 : i32 to index
    %c0_43 = arith.constant 0 : index
    %120 = vector.load %arg5[%119, %c0_43] : memref<50x128xf32, #tpu.memory_space<vmem>>, vector<1x128xf32>
    %121 = arith.addf %114, %120 : vector<1x128xf32>
    %122 = arith.index_cast %c2_i32_28 : i32 to index
    %c0_44 = arith.constant 0 : index
    %123 = vector.load %arg9[%122, %c0_44] : memref<8x128xf32, #tpu.memory_space<vmem>>, vector<1x128xf32>
    tpu.vector_store %arg9[%122, %c0_44], %121 {strides = array<i32>} : memref<8x128xf32, #tpu.memory_space<vmem>>, vector<1x128xf32>,
    %c3_i32_45 = arith.constant 3 : i32
    %124 = arith.addi %0, %c3_i32_45 : i32
    %125 = arith.index_cast %124 : i32 to index
    %126 = memref.load %arg1[%125] : memref<24xi32, #tpu.memory_space<smem>>
    %127 = arith.index_cast %126 : i32 to index
    %c0_46 = arith.constant 0 : index
    %128 = vector.load %arg4[%127, %c0_46] : memref<50x128xf32, #tpu.memory_space<vmem>>, vector<1x128xf32>
    %129 = arith.index_cast %c3_i32_45 : i32 to index
    %c0_47 = arith.constant 0 : index
    %130 = vector.load %arg7[%129, %c0_47] : memref<8x128xf32, #tpu.memory_space<vmem>>, vector<1x128xf32>
    tpu.vector_store %arg7[%129, %c0_47], %128 {strides = array<i32>} : memref<8x128xf32, #tpu.memory_space<vmem>>, vector<1x128xf32>,
    %131 = arith.index_cast %124 : i32 to index
    %132 = memref.load %arg2[%131] : memref<24xi32, #tpu.memory_space<smem>>
    %133 = arith.index_cast %132 : i32 to index
    %c0_48 = arith.constant 0 : index
    %134 = vector.load %arg5[%133, %c0_48] : memref<50x128xf32, #tpu.memory_space<vmem>>, vector<1x128xf32>
    %135 = arith.index_cast %c3_i32_45 : i32 to index
    %c0_49 = arith.constant 0 : index
    %136 = vector.load %arg8[%135, %c0_49] : memref<8x128xf32, #tpu.memory_space<vmem>>, vector<1x128xf32>
    tpu.vector_store %arg8[%135, %c0_49], %134 {strides = array<i32>} : memref<8x128xf32, #tpu.memory_space<vmem>>, vector<1x128xf32>,
    %c4_i32_50 = arith.constant 4 : i32
    %137 = arith.muli %124, %c4_i32_50 : i32
    %138 = arith.index_cast %137 : i32 to index
    %139 = memref.load %arg3[%138] : memref<96xi32, #tpu.memory_space<smem>>
    %140 = arith.index_cast %139 : i32 to index
    %c0_51 = arith.constant 0 : index
    %141 = vector.load %arg5[%140, %c0_51] : memref<50x128xf32, #tpu.memory_space<vmem>>, vector<1x128xf32>
    %c4_i32_52 = arith.constant 4 : i32
    %142 = arith.muli %124, %c4_i32_52 : i32
    %c1_i32_53 = arith.constant 1 : i32
    %143 = arith.addi %142, %c1_i32_53 : i32
    %144 = arith.index_cast %143 : i32 to index
    %145 = memref.load %arg3[%144] : memref<96xi32, #tpu.memory_space<smem>>
    %146 = arith.index_cast %145 : i32 to index
    %c0_54 = arith.constant 0 : index
    %147 = vector.load %arg5[%146, %c0_54] : memref<50x128xf32, #tpu.memory_space<vmem>>, vector<1x128xf32>
    %148 = arith.addf %141, %147 : vector<1x128xf32>
    %c4_i32_55 = arith.constant 4 : i32
    %149 = arith.muli %124, %c4_i32_55 : i32
    %c2_i32_56 = arith.constant 2 : i32
    %150 = arith.addi %149, %c2_i32_56 : i32
    %151 = arith.index_cast %150 : i32 to index
    %152 = memref.load %arg3[%151] : memref<96xi32, #tpu.memory_space<smem>>
    %153 = arith.index_cast %152 : i32 to index
    %c0_57 = arith.constant 0 : index
    %154 = vector.load %arg5[%153, %c0_57] : memref<50x128xf32, #tpu.memory_space<vmem>>, vector<1x128xf32>
    %155 = arith.addf %148, %154 : vector<1x128xf32>
    %c4_i32_58 = arith.constant 4 : i32
    %156 = arith.muli %124, %c4_i32_58 : i32
    %c3_i32_59 = arith.constant 3 : i32
    %157 = arith.addi %156, %c3_i32_59 : i32
    %158 = arith.index_cast %157 : i32 to index
    %159 = memref.load %arg3[%158] : memref<96xi32, #tpu.memory_space<smem>>
    %160 = arith.index_cast %159 : i32 to index
    %c0_60 = arith.constant 0 : index
    %161 = vector.load %arg5[%160, %c0_60] : memref<50x128xf32, #tpu.memory_space<vmem>>, vector<1x128xf32>
    %162 = arith.addf %155, %161 : vector<1x128xf32>
    %163 = arith.index_cast %c3_i32_45 : i32 to index
    %c0_61 = arith.constant 0 : index
    %164 = vector.load %arg9[%163, %c0_61] : memref<8x128xf32, #tpu.memory_space<vmem>>, vector<1x128xf32>
    tpu.vector_store %arg9[%163, %c0_61], %162 {strides = array<i32>} : memref<8x128xf32, #tpu.memory_space<vmem>>, vector<1x128xf32>,
    %c4_i32_62 = arith.constant 4 : i32
    %165 = arith.addi %0, %c4_i32_62 : i32
    %166 = arith.index_cast %165 : i32 to index
    %167 = memref.load %arg1[%166] : memref<24xi32, #tpu.memory_space<smem>>
    %168 = arith.index_cast %167 : i32 to index
    %c0_63 = arith.constant 0 : index
    %169 = vector.load %arg4[%168, %c0_63] : memref<50x128xf32, #tpu.memory_space<vmem>>, vector<1x128xf32>
    %170 = arith.index_cast %c4_i32_62 : i32 to index
    %c0_64 = arith.constant 0 : index
    %171 = vector.load %arg7[%170, %c0_64] : memref<8x128xf32, #tpu.memory_space<vmem>>, vector<1x128xf32>
    tpu.vector_store %arg7[%170, %c0_64], %169 {strides = array<i32>} : memref<8x128xf32, #tpu.memory_space<vmem>>, vector<1x128xf32>,
    %172 = arith.index_cast %165 : i32 to index
    %173 = memref.load %arg2[%172] : memref<24xi32, #tpu.memory_space<smem>>
    %174 = arith.index_cast %173 : i32 to index
    %c0_65 = arith.constant 0 : index
    %175 = vector.load %arg5[%174, %c0_65] : memref<50x128xf32, #tpu.memory_space<vmem>>, vector<1x128xf32>
    %176 = arith.index_cast %c4_i32_62 : i32 to index
    %c0_66 = arith.constant 0 : index
    %177 = vector.load %arg8[%176, %c0_66] : memref<8x128xf32, #tpu.memory_space<vmem>>, vector<1x128xf32>
    tpu.vector_store %arg8[%176, %c0_66], %175 {strides = array<i32>} : memref<8x128xf32, #tpu.memory_space<vmem>>, vector<1x128xf32>,
    %c4_i32_67 = arith.constant 4 : i32
    %178 = arith.muli %165, %c4_i32_67 : i32
    %179 = arith.index_cast %178 : i32 to index
    %180 = memref.load %arg3[%179] : memref<96xi32, #tpu.memory_space<smem>>
    %181 = arith.index_cast %180 : i32 to index
    %c0_68 = arith.constant 0 : index
    %182 = vector.load %arg5[%181, %c0_68] : memref<50x128xf32, #tpu.memory_space<vmem>>, vector<1x128xf32>
    %c4_i32_69 = arith.constant 4 : i32
    %183 = arith.muli %165, %c4_i32_69 : i32
    %c1_i32_70 = arith.constant 1 : i32
    %184 = arith.addi %183, %c1_i32_70 : i32
    %185 = arith.index_cast %184 : i32 to index
    %186 = memref.load %arg3[%185] : memref<96xi32, #tpu.memory_space<smem>>
    %187 = arith.index_cast %186 : i32 to index
    %c0_71 = arith.constant 0 : index
    %188 = vector.load %arg5[%187, %c0_71] : memref<50x128xf32, #tpu.memory_space<vmem>>, vector<1x128xf32>
    %189 = arith.addf %182, %188 : vector<1x128xf32>
    %c4_i32_72 = arith.constant 4 : i32
    %190 = arith.muli %165, %c4_i32_72 : i32
    %c2_i32_73 = arith.constant 2 : i32
    %191 = arith.addi %190, %c2_i32_73 : i32
    %192 = arith.index_cast %191 : i32 to index
    %193 = memref.load %arg3[%192] : memref<96xi32, #tpu.memory_space<smem>>
    %194 = arith.index_cast %193 : i32 to index
    %c0_74 = arith.constant 0 : index
    %195 = vector.load %arg5[%194, %c0_74] : memref<50x128xf32, #tpu.memory_space<vmem>>, vector<1x128xf32>
    %196 = arith.addf %189, %195 : vector<1x128xf32>
    %c4_i32_75 = arith.constant 4 : i32
    %197 = arith.muli %165, %c4_i32_75 : i32
    %c3_i32_76 = arith.constant 3 : i32
    %198 = arith.addi %197, %c3_i32_76 : i32
    %199 = arith.index_cast %198 : i32 to index
    %200 = memref.load %arg3[%199] : memref<96xi32, #tpu.memory_space<smem>>
    %201 = arith.index_cast %200 : i32 to index
    %c0_77 = arith.constant 0 : index
    %202 = vector.load %arg5[%201, %c0_77] : memref<50x128xf32, #tpu.memory_space<vmem>>, vector<1x128xf32>
    %203 = arith.addf %196, %202 : vector<1x128xf32>
    %204 = arith.index_cast %c4_i32_62 : i32 to index
    %c0_78 = arith.constant 0 : index
    %205 = vector.load %arg9[%204, %c0_78] : memref<8x128xf32, #tpu.memory_space<vmem>>, vector<1x128xf32>
    tpu.vector_store %arg9[%204, %c0_78], %203 {strides = array<i32>} : memref<8x128xf32, #tpu.memory_space<vmem>>, vector<1x128xf32>,
    %c5_i32 = arith.constant 5 : i32
    %206 = arith.addi %0, %c5_i32 : i32
    %207 = arith.index_cast %206 : i32 to index
    %208 = memref.load %arg1[%207] : memref<24xi32, #tpu.memory_space<smem>>
    %209 = arith.index_cast %208 : i32 to index
    %c0_79 = arith.constant 0 : index
    %210 = vector.load %arg4[%209, %c0_79] : memref<50x128xf32, #tpu.memory_space<vmem>>, vector<1x128xf32>
    %211 = arith.index_cast %c5_i32 : i32 to index
    %c0_80 = arith.constant 0 : index
    %212 = vector.load %arg7[%211, %c0_80] : memref<8x128xf32, #tpu.memory_space<vmem>>, vector<1x128xf32>
    tpu.vector_store %arg7[%211, %c0_80], %210 {strides = array<i32>} : memref<8x128xf32, #tpu.memory_space<vmem>>, vector<1x128xf32>,
    %213 = arith.index_cast %206 : i32 to index
    %214 = memref.load %arg2[%213] : memref<24xi32, #tpu.memory_space<smem>>
    %215 = arith.index_cast %214 : i32 to index
    %c0_81 = arith.constant 0 : index
    %216 = vector.load %arg5[%215, %c0_81] : memref<50x128xf32, #tpu.memory_space<vmem>>, vector<1x128xf32>
    %217 = arith.index_cast %c5_i32 : i32 to index
    %c0_82 = arith.constant 0 : index
    %218 = vector.load %arg8[%217, %c0_82] : memref<8x128xf32, #tpu.memory_space<vmem>>, vector<1x128xf32>
    tpu.vector_store %arg8[%217, %c0_82], %216 {strides = array<i32>} : memref<8x128xf32, #tpu.memory_space<vmem>>, vector<1x128xf32>,
    %c4_i32_83 = arith.constant 4 : i32
    %219 = arith.muli %206, %c4_i32_83 : i32
    %220 = arith.index_cast %219 : i32 to index
    %221 = memref.load %arg3[%220] : memref<96xi32, #tpu.memory_space<smem>>
    %222 = arith.index_cast %221 : i32 to index
    %c0_84 = arith.constant 0 : index
    %223 = vector.load %arg5[%222, %c0_84] : memref<50x128xf32, #tpu.memory_space<vmem>>, vector<1x128xf32>
    %c4_i32_85 = arith.constant 4 : i32
    %224 = arith.muli %206, %c4_i32_85 : i32
    %c1_i32_86 = arith.constant 1 : i32
    %225 = arith.addi %224, %c1_i32_86 : i32
    %226 = arith.index_cast %225 : i32 to index
    %227 = memref.load %arg3[%226] : memref<96xi32, #tpu.memory_space<smem>>
    %228 = arith.index_cast %227 : i32 to index
    %c0_87 = arith.constant 0 : index
    %229 = vector.load %arg5[%228, %c0_87] : memref<50x128xf32, #tpu.memory_space<vmem>>, vector<1x128xf32>
    %230 = arith.addf %223, %229 : vector<1x128xf32>
    %c4_i32_88 = arith.constant 4 : i32
    %231 = arith.muli %206, %c4_i32_88 : i32
    %c2_i32_89 = arith.constant 2 : i32
    %232 = arith.addi %231, %c2_i32_89 : i32
    %233 = arith.index_cast %232 : i32 to index
    %234 = memref.load %arg3[%233] : memref<96xi32, #tpu.memory_space<smem>>
    %235 = arith.index_cast %234 : i32 to index
    %c0_90 = arith.constant 0 : index
    %236 = vector.load %arg5[%235, %c0_90] : memref<50x128xf32, #tpu.memory_space<vmem>>, vector<1x128xf32>
    %237 = arith.addf %230, %236 : vector<1x128xf32>
    %c4_i32_91 = arith.constant 4 : i32
    %238 = arith.muli %206, %c4_i32_91 : i32
    %c3_i32_92 = arith.constant 3 : i32
    %239 = arith.addi %238, %c3_i32_92 : i32
    %240 = arith.index_cast %239 : i32 to index
    %241 = memref.load %arg3[%240] : memref<96xi32, #tpu.memory_space<smem>>
    %242 = arith.index_cast %241 : i32 to index
    %c0_93 = arith.constant 0 : index
    %243 = vector.load %arg5[%242, %c0_93] : memref<50x128xf32, #tpu.memory_space<vmem>>, vector<1x128xf32>
    %244 = arith.addf %237, %243 : vector<1x128xf32>
    %245 = arith.index_cast %c5_i32 : i32 to index
    %c0_94 = arith.constant 0 : index
    %246 = vector.load %arg9[%245, %c0_94] : memref<8x128xf32, #tpu.memory_space<vmem>>, vector<1x128xf32>
    tpu.vector_store %arg9[%245, %c0_94], %244 {strides = array<i32>} : memref<8x128xf32, #tpu.memory_space<vmem>>, vector<1x128xf32>,
    %c6_i32 = arith.constant 6 : i32
    %247 = arith.addi %0, %c6_i32 : i32
    %248 = arith.index_cast %247 : i32 to index
    %249 = memref.load %arg1[%248] : memref<24xi32, #tpu.memory_space<smem>>
    %250 = arith.index_cast %249 : i32 to index
    %c0_95 = arith.constant 0 : index
    %251 = vector.load %arg4[%250, %c0_95] : memref<50x128xf32, #tpu.memory_space<vmem>>, vector<1x128xf32>
    %252 = arith.index_cast %c6_i32 : i32 to index
    %c0_96 = arith.constant 0 : index
    %253 = vector.load %arg7[%252, %c0_96] : memref<8x128xf32, #tpu.memory_space<vmem>>, vector<1x128xf32>
    tpu.vector_store %arg7[%252, %c0_96], %251 {strides = array<i32>} : memref<8x128xf32, #tpu.memory_space<vmem>>, vector<1x128xf32>,
    %254 = arith.index_cast %247 : i32 to index
    %255 = memref.load %arg2[%254] : memref<24xi32, #tpu.memory_space<smem>>
    %256 = arith.index_cast %255 : i32 to index
    %c0_97 = arith.constant 0 : index
    %257 = vector.load %arg5[%256, %c0_97] : memref<50x128xf32, #tpu.memory_space<vmem>>, vector<1x128xf32>
    %258 = arith.index_cast %c6_i32 : i32 to index
    %c0_98 = arith.constant 0 : index
    %259 = vector.load %arg8[%258, %c0_98] : memref<8x128xf32, #tpu.memory_space<vmem>>, vector<1x128xf32>
    tpu.vector_store %arg8[%258, %c0_98], %257 {strides = array<i32>} : memref<8x128xf32, #tpu.memory_space<vmem>>, vector<1x128xf32>,
    %c4_i32_99 = arith.constant 4 : i32
    %260 = arith.muli %247, %c4_i32_99 : i32
    %261 = arith.index_cast %260 : i32 to index
    %262 = memref.load %arg3[%261] : memref<96xi32, #tpu.memory_space<smem>>
    %263 = arith.index_cast %262 : i32 to index
    %c0_100 = arith.constant 0 : index
    %264 = vector.load %arg5[%263, %c0_100] : memref<50x128xf32, #tpu.memory_space<vmem>>, vector<1x128xf32>
    %c4_i32_101 = arith.constant 4 : i32
    %265 = arith.muli %247, %c4_i32_101 : i32
    %c1_i32_102 = arith.constant 1 : i32
    %266 = arith.addi %265, %c1_i32_102 : i32
    %267 = arith.index_cast %266 : i32 to index
    %268 = memref.load %arg3[%267] : memref<96xi32, #tpu.memory_space<smem>>
    %269 = arith.index_cast %268 : i32 to index
    %c0_103 = arith.constant 0 : index
    %270 = vector.load %arg5[%269, %c0_103] : memref<50x128xf32, #tpu.memory_space<vmem>>, vector<1x128xf32>
    %271 = arith.addf %264, %270 : vector<1x128xf32>
    %c4_i32_104 = arith.constant 4 : i32
    %272 = arith.muli %247, %c4_i32_104 : i32
    %c2_i32_105 = arith.constant 2 : i32
    %273 = arith.addi %272, %c2_i32_105 : i32
    %274 = arith.index_cast %273 : i32 to index
    %275 = memref.load %arg3[%274] : memref<96xi32, #tpu.memory_space<smem>>
    %276 = arith.index_cast %275 : i32 to index
    %c0_106 = arith.constant 0 : index
    %277 = vector.load %arg5[%276, %c0_106] : memref<50x128xf32, #tpu.memory_space<vmem>>, vector<1x128xf32>
    %278 = arith.addf %271, %277 : vector<1x128xf32>
    %c4_i32_107 = arith.constant 4 : i32
    %279 = arith.muli %247, %c4_i32_107 : i32
    %c3_i32_108 = arith.constant 3 : i32
    %280 = arith.addi %279, %c3_i32_108 : i32
    %281 = arith.index_cast %280 : i32 to index
    %282 = memref.load %arg3[%281] : memref<96xi32, #tpu.memory_space<smem>>
    %283 = arith.index_cast %282 : i32 to index
    %c0_109 = arith.constant 0 : index
    %284 = vector.load %arg5[%283, %c0_109] : memref<50x128xf32, #tpu.memory_space<vmem>>, vector<1x128xf32>
    %285 = arith.addf %278, %284 : vector<1x128xf32>
    %286 = arith.index_cast %c6_i32 : i32 to index
    %c0_110 = arith.constant 0 : index
    %287 = vector.load %arg9[%286, %c0_110] : memref<8x128xf32, #tpu.memory_space<vmem>>, vector<1x128xf32>
    tpu.vector_store %arg9[%286, %c0_110], %285 {strides = array<i32>} : memref<8x128xf32, #tpu.memory_space<vmem>>, vector<1x128xf32>,
    %c7_i32 = arith.constant 7 : i32
    %288 = arith.addi %0, %c7_i32 : i32
    %289 = arith.index_cast %288 : i32 to index
    %290 = memref.load %arg1[%289] : memref<24xi32, #tpu.memory_space<smem>>
    %291 = arith.index_cast %290 : i32 to index
    %c0_111 = arith.constant 0 : index
    %292 = vector.load %arg4[%291, %c0_111] : memref<50x128xf32, #tpu.memory_space<vmem>>, vector<1x128xf32>
    %293 = arith.index_cast %c7_i32 : i32 to index
    %c0_112 = arith.constant 0 : index
    %294 = vector.load %arg7[%293, %c0_112] : memref<8x128xf32, #tpu.memory_space<vmem>>, vector<1x128xf32>
    tpu.vector_store %arg7[%293, %c0_112], %292 {strides = array<i32>} : memref<8x128xf32, #tpu.memory_space<vmem>>, vector<1x128xf32>,
    %295 = arith.index_cast %288 : i32 to index
    %296 = memref.load %arg2[%295] : memref<24xi32, #tpu.memory_space<smem>>
    %297 = arith.index_cast %296 : i32 to index
    %c0_113 = arith.constant 0 : index
    %298 = vector.load %arg5[%297, %c0_113] : memref<50x128xf32, #tpu.memory_space<vmem>>, vector<1x128xf32>
    %299 = arith.index_cast %c7_i32 : i32 to index
    %c0_114 = arith.constant 0 : index
    %300 = vector.load %arg8[%299, %c0_114] : memref<8x128xf32, #tpu.memory_space<vmem>>, vector<1x128xf32>
    tpu.vector_store %arg8[%299, %c0_114], %298 {strides = array<i32>} : memref<8x128xf32, #tpu.memory_space<vmem>>, vector<1x128xf32>,
    %c4_i32_115 = arith.constant 4 : i32
    %301 = arith.muli %288, %c4_i32_115 : i32
    %302 = arith.index_cast %301 : i32 to index
    %303 = memref.load %arg3[%302] : memref<96xi32, #tpu.memory_space<smem>>
    %304 = arith.index_cast %303 : i32 to index
    %c0_116 = arith.constant 0 : index
    %305 = vector.load %arg5[%304, %c0_116] : memref<50x128xf32, #tpu.memory_space<vmem>>, vector<1x128xf32>
    %c4_i32_117 = arith.constant 4 : i32
    %306 = arith.muli %288, %c4_i32_117 : i32
    %c1_i32_118 = arith.constant 1 : i32
    %307 = arith.addi %306, %c1_i32_118 : i32
    %308 = arith.index_cast %307 : i32 to index
    %309 = memref.load %arg3[%308] : memref<96xi32, #tpu.memory_space<smem>>
    %310 = arith.index_cast %309 : i32 to index
    %c0_119 = arith.constant 0 : index
    %311 = vector.load %arg5[%310, %c0_119] : memref<50x128xf32, #tpu.memory_space<vmem>>, vector<1x128xf32>
    %312 = arith.addf %305, %311 : vector<1x128xf32>
    %c4_i32_120 = arith.constant 4 : i32
    %313 = arith.muli %288, %c4_i32_120 : i32
    %c2_i32_121 = arith.constant 2 : i32
    %314 = arith.addi %313, %c2_i32_121 : i32
    %315 = arith.index_cast %314 : i32 to index
    %316 = memref.load %arg3[%315] : memref<96xi32, #tpu.memory_space<smem>>
    %317 = arith.index_cast %316 : i32 to index
    %c0_122 = arith.constant 0 : index
    %318 = vector.load %arg5[%317, %c0_122] : memref<50x128xf32, #tpu.memory_space<vmem>>, vector<1x128xf32>
    %319 = arith.addf %312, %318 : vector<1x128xf32>
    %c4_i32_123 = arith.constant 4 : i32
    %320 = arith.muli %288, %c4_i32_123 : i32
    %c3_i32_124 = arith.constant 3 : i32
    %321 = arith.addi %320, %c3_i32_124 : i32
    %322 = arith.index_cast %321 : i32 to index
    %323 = memref.load %arg3[%322] : memref<96xi32, #tpu.memory_space<smem>>
    %324 = arith.index_cast %323 : i32 to index
    %c0_125 = arith.constant 0 : index
    %325 = vector.load %arg5[%324, %c0_125] : memref<50x128xf32, #tpu.memory_space<vmem>>, vector<1x128xf32>
    %326 = arith.addf %319, %325 : vector<1x128xf32>
    %327 = arith.index_cast %c7_i32 : i32 to index
    %c0_126 = arith.constant 0 : index
    %328 = vector.load %arg9[%327, %c0_126] : memref<8x128xf32, #tpu.memory_space<vmem>>, vector<1x128xf32>
    tpu.vector_store %arg9[%327, %c0_126], %326 {strides = array<i32>} : memref<8x128xf32, #tpu.memory_space<vmem>>, vector<1x128xf32>,
    %c8_i32_127 = arith.constant 8 : i32
    %c0_128 = arith.constant 0 : index
    %c0_129 = arith.constant 0 : index
    %329 = vector.load %arg7[%c0_128, %c0_129] : memref<8x128xf32, #tpu.memory_space<vmem>>, vector<8x128xf32>
    %c0_130 = arith.constant 0 : index
    %c0_131 = arith.constant 0 : index
    %330 = vector.load %arg8[%c0_130, %c0_131] : memref<8x128xf32, #tpu.memory_space<vmem>>, vector<8x128xf32>
    %331 = arith.mulf %330, %329 : vector<8x128xf32>
    %cst = arith.constant dense<0.000000e+00> : vector<8xf32>
    %332 = vector.multi_reduction <add>, %331, %cst [1] : vector<8x128xf32> to vector<8xf32>
    %333 = vector.shape_cast %332 : vector<8xf32> to vector<8x1xf32>
    %c0_132 = arith.constant 0 : index
    %c0_133 = arith.constant 0 : index
    %334 = vector.load %arg9[%c0_132, %c0_133] : memref<8x128xf32, #tpu.memory_space<vmem>>, vector<8x128xf32>
    %335 = arith.mulf %334, %329 : vector<8x128xf32>
    %cst_134 = arith.constant dense<0.000000e+00> : vector<8xf32>
    %336 = vector.multi_reduction <add>, %335, %cst_134 [1] : vector<8x128xf32> to vector<8xf32>
    %337 = vector.shape_cast %336 : vector<8xf32> to vector<8x1xf32>
    %cst_135 = arith.constant 0.000000e+00 : f32
    %338 = vector.broadcast %cst_135 : f32 to vector<8x1xf32>
    %339 = arith.subf %338, %337 : vector<8x1xf32>
    %cst_136 = arith.constant 0.000000e+00 : f32
    %340 = vector.broadcast %cst_136 : f32 to vector<8x1xf32>
    %341 = arith.subf %340, %333 : vector<8x1xf32>
    %cst_137 = arith.constant 0.000000e+00 : f32
    %342 = vector.broadcast %cst_137 : f32 to vector<8x1xf32>
    %343 = arith.maximumf %341, %342 : vector<8x1xf32>
    %344 = math.absf %333 : vector<8x1xf32>
    %cst_138 = arith.constant 0.000000e+00 : f32
    %345 = vector.broadcast %cst_138 : f32 to vector<8x1xf32>
    %346 = arith.subf %345, %344 : vector<8x1xf32>
    %347 = math.exp %346 : vector<8x1xf32>
    %348 = math.log1p %347 : vector<8x1xf32>
    %349 = arith.addf %343, %348 : vector<8x1xf32>
    %cst_139 = arith.constant 0.000000e+00 : f32
    %350 = vector.broadcast %cst_139 : f32 to vector<8x1xf32>
    %351 = arith.subf %350, %349 : vector<8x1xf32>
    %cst_140 = arith.constant 0.000000e+00 : f32
    %352 = vector.broadcast %cst_140 : f32 to vector<8x1xf32>
    %353 = arith.subf %352, %339 : vector<8x1xf32>
    %cst_141 = arith.constant 0.000000e+00 : f32
    %354 = vector.broadcast %cst_141 : f32 to vector<8x1xf32>
    %355 = arith.maximumf %353, %354 : vector<8x1xf32>
    %356 = math.absf %339 : vector<8x1xf32>
    %cst_142 = arith.constant 0.000000e+00 : f32
    %357 = vector.broadcast %cst_142 : f32 to vector<8x1xf32>
    %358 = arith.subf %357, %356 : vector<8x1xf32>
    %359 = math.exp %358 : vector<8x1xf32>
    %360 = math.log1p %359 : vector<8x1xf32>
    %361 = arith.addf %355, %360 : vector<8x1xf32>
    %cst_143 = arith.constant 0.000000e+00 : f32
    %362 = vector.broadcast %cst_143 : f32 to vector<8x1xf32>
    %363 = arith.subf %362, %361 : vector<8x1xf32>
    %364 = arith.addf %351, %363 : vector<8x1xf32>
    %365 = tpu.iota {dimensions = array<i32: 0>} : vector<8x1xi32>
    %366 = vector.broadcast %0 : i32 to vector<8x1xi32>
    %367 = arith.addi %366, %365 : vector<8x1xi32>
    %c20_i32 = arith.constant 20 : i32
    %368 = vector.broadcast %c20_i32 : i32 to vector<8x1xi32>
    %369 = arith.cmpi slt, %367, %368 : vector<8x1xi32>
    %cst_144 = arith.constant 0.000000e+00 : f32
    %370 = vector.broadcast %cst_144 : f32 to vector<8x1xf32>
    %371 = arith.select %369, %364, %370 : vector<8x1xi1>, vector<8x1xf32>
    %372 = vector.shape_cast %371 : vector<8x1xf32> to vector<1x8x1xf32>
    %cst_145 = arith.constant dense<0.000000e+00> : vector<1xf32>
    %373 = vector.multi_reduction <add>, %372, %cst_145 [1, 2] : vector<1x8x1xf32> to vector<1xf32>
    %374 = vector.shape_cast %373 : vector<1xf32> to vector<1x1x1xf32>
    %375 = vector.extract %374[0, 0, 0] : f32 from vector<1x1x1xf32>
    %376 = vector.broadcast %375 : f32 to vector<1x8x128xf32>
    %c0_146 = arith.constant 0 : index
    %c0_147 = arith.constant 0 : index
    %c0_148 = arith.constant 0 : index
    %377 = vector.load %arg6[%c0_146, %c0_147, %c0_148] : memref<1x8x128xf32, #tpu.memory_space<vmem>>, vector<1x8x128xf32>
    tpu.vector_store %arg6[%c0_146, %c0_147, %c0_148], %376 {strides = array<i32>} : memref<1x8x128xf32, #tpu.memory_space<vmem>>, vector<1x8x128xf32>,
    return
  }
  func.func @transform_0(%arg0: i32, %arg1: memref<24xi32, #tpu.memory_space<smem>>, %arg2: memref<24xi32, #tpu.memory_space<smem>>, %arg3: memref<96xi32, #tpu.memory_space<smem>>) -> (i32, i32) {
    %c0_i32 = arith.constant 0 : i32
    %c0_i32_0 = arith.constant 0 : i32
    %c0_i32_1 = arith.constant 0 : i32
    return %c0_i32, %c0_i32_0 : i32, i32
  }
  func.func @transform_1(%arg0: i32, %arg1: memref<24xi32, #tpu.memory_space<smem>>, %arg2: memref<24xi32, #tpu.memory_space<smem>>, %arg3: memref<96xi32, #tpu.memory_space<smem>>) -> (i32, i32) {
    %c0_i32 = arith.constant 0 : i32
    %c0_i32_0 = arith.constant 0 : i32
    %c0_i32_1 = arith.constant 0 : i32
    return %c0_i32, %c0_i32_0 : i32, i32
  }
  func.func @transform_2(%arg0: i32, %arg1: memref<24xi32, #tpu.memory_space<smem>>, %arg2: memref<24xi32, #tpu.memory_space<smem>>, %arg3: memref<96xi32, #tpu.memory_space<smem>>) -> (i32, i32, i32) {
    %c0_i32 = arith.constant 0 : i32
    %c0_i32_0 = arith.constant 0 : i32
    %c0_i32_1 = arith.constant 0 : i32
    return %arg0, %c0_i32, %c0_i32_0 : i32, i32, i32
  }
}

</mosaic_0001>

<bundles_post_ra>
// kernel: tpu_custom_call.1
= control target key start
LH: loop header
LB: loop body
LE: loop exit
PB: predicated region body
PF: predicated region fallthrough
CT: control target
= control target key end

     0   :  { %s1153_s0 = inlined_call_operand.hbm [shape: s32[24], index: 0, kind: input, shape index: {}]   ;;  %s1154_s3 = inlined_call_operand.hbm [shape: f32[50,128], index: 3, kind: input, shape index: {}]   ;;  %s1155_s4 = inlined_call_operand.hbm [shape: f32[50,128], index: 4, kind: input, shape index: {}]   ;;  %s1156_s5 = inlined_call_operand.hbm [shape: f32[3,8,128], index: 5, kind: output, shape index: {}]   ;;  %s1157_s1 = inlined_call_operand.vmem [shape: s32[24], index: 1, kind: input, shape index: {}]   ;;  %s1158_s2 = inlined_call_operand.vmem [shape: s32[96], index: 2, kind: input, shape index: {}]  }
   0x1   :  { %1168 = sst [smem:[#allocation20_spill]] %s1154_s3  ;;  %s711_s20 = scalar_lea.hbm %s1153_s0, 16 }
   0x2   :  { %1169 = sst [smem:[#allocation21_spill]] %s1155_s4  ;;  %p712_p0 = scmp.ne.s32.totalorder %s1153_s0, %s711_s20 }
   0x3   :  { %p715_p1 = scmp.lt.u32.totalorder %s711_s20, %s1153_s0 }
   0x5   :  { %p717_p2 = pnand %p715_p1, %p712_p0 }
   0x7   :  { %720 = shalt.err (!%p717_p2)  }
   0x8   :  { %s875_s25 = smov [#allocation6]   ;;  %s12_s30 = sshll.u32 %s1157_s1, 4  ;;  %s13_s30 = int_to_ptr.vmem [resolvable:$true] %s12_s30 }
   0x9   :  { %11 = dma.hbm_to_smem %s1153_s0, 16, %s875_s25, [#allocation5] }
   0xa   :  { %s16_s8 = sshll.u32 %s1158_s2, 4  ;;  %s721_s9 = scalar_lea.vmem %s13_s30, 16  ;;  %s17_s8 = int_to_ptr.vmem [resolvable:$true] %s16_s8 }
   0xb   :  { %p722_p3 = scmp.ne.s32.totalorder %s13_s30, %s721_s9  ;;  %p726_p4 = scmp.lt.s32.totalorder %s13_s30, %s13_s30 }
   0xc   :  { %p727_p5 = scmp.lt.s32.totalorder %s721_s9, %s721_s9 }
   0xe   :  { %p728_p6 = por %p727_p5, %p726_p4 }
  0x10   :  { %p729_p7 = pnand %p728_p6, %p722_p3 }
  0x12   :  { %732 = shalt.err (!%p729_p7)  }
  0x13   :  { %s876_s10 = smov [#allocation7]   ;;  %s733_s0 = scalar_lea.vmem %s17_s8, 16 }
  0x14   :  { %15 = dma.vmem_to_smem %s13_s30, 16, %s876_s10, [#allocation5] }
  0x15   :  { %p734_p8 = scmp.ne.s32.totalorder %s17_s8, %s733_s0  ;;  %p738_p9 = scmp.lt.s32.totalorder %s17_s8, %s17_s8 }
  0x16   :  { %p739_p10 = scmp.lt.s32.totalorder %s733_s0, %s733_s0 }
  0x18   :  { %p740_p11 = por %p739_p10, %p738_p9 }
  0x1a   :  { %p741_p12 = pnand %p740_p11, %p734_p8 }
  0x1c   :  { %744 = shalt.err (!%p741_p12)  }
  0x1d   :  { %s877_s1 = smov [#allocation8]  }
  0x1e   :  { %19 = dma.vmem_to_smem %s17_s8, 16, %s877_s1, [#allocation5] }
  0x1f   :  { %845 = dma.done.wait [#allocation5], 48 }
  0x20   :  { %846 = vsyncadd [#allocation5], 4294967248 }
  0x21   :  { %21 = sfence }
  0x22   :  { %22 = vsyncpa [#allocation10], 0 }
  0x23   :  { %23 = vsyncpa [#allocation13], 0 }
  0x24   :  { %24 = vsyncpa [#allocation11], 0 }
  0x25   :  { %26 = vsyncpa [#allocation11 + $0x1], 0  ;;  %s931_s2 = smov 0   ;;  %s933_s11 = smov 0  }
  0x26   :  { %s935_s12 = smov 0   ;;  %s937_s13 = smov 0  }
  0x27 LB: > { %s952_s14 = sadd.s32 4294967295, %s873_s13   ;;  %s594_s15 = sadd.s32 4294967294, %s873_s13   ;;  %s873_s13 = sphi %s937_s13, %s1194_s13   ;;  %s869_s12 = sphi %s935_s12, %s1193_s12   ;;  %s865_s11 = sphi %s933_s11, %s1192_s11   ;;  %s861_s2 = sphi %s931_s2, %s1191_s2  }
  0x28   : > { %s956_s16 = sadd.s32 1, %s873_s13   ;;  %s81_s17 = sadd.s32 1, %s869_s12 }
  0x29   : > { %s78_s18 = ssub.s32 %s873_s13, %s956_s16  ;;  %p91_p13 = scmp.ne.s32.totalorder %s869_s12, %s865_s11 }
  0x2a   : > { %p79_p0 = scmp.eq.s32.totalorder %s78_s18, 0  ;;  %p92_p1 = scmp.eq.s32.totalorder %s952_s14, 2 }
  0x2b   : > { %p97_p2 = scmp.ne.s32.totalorder %s865_s11, %s861_s2  ;;  %p98_p3 = scmp.eq.s32.totalorder %s594_s15, 2 }
  0x2c   : > { %s967_s19 = scalar_select %p79_p0, %s869_s12, %s81_s17  }
  0x2d   : > { %p969_p4 = por %p92_p1, %p91_p13  ;;  %p973_p5 = por %p98_p3, %p97_p2 }
  0x2e   : > { %1170 = sst [smem:[#allocation19_spill]] %s967_s19  ;;  %p595_p6 = scmp.ge.s32.totalorder %s873_s13, 1 }
  0x2f   : > { %s1171_s20 = scalar_select %p969_p4, 1, 0 }
  0x30   : > { %s1172_s21 = scalar_select %p973_p5, 1, 0 }
  0x31   : > { %p105_p7 = scmp.lt.s32.totalorder %s873_s13, 4  ;;  %p1159_p8 = scmp.eq.s32.totalorder %s952_s14, 0 }
  0x32   : > { %s878_s23 = smov [#allocation9]   ;;  %s879_s26 = smov [#allocation12]  }
  0x33   : > { %p980_p9 = pnand %p595_p6, %p105_p7  ;;  %s117_s24 = sshll.u32 %s878_s23, 4  ;;  %s118_s24 = int_to_ptr.vmem [resolvable:$true] %s117_s24 }
  0x34   : > { %s130_s27 = sshll.u32 %s879_s26, 4  ;;  %s1175_s3 = sld [smem:[#allocation20_spill]]  ;;  %s992_s27 = int_to_ptr.vmem [resolvable:$true] %s130_s27 }
  0x35   : > { %s1173_s22 = scalar_select %p980_p9, 1, 0 }
  0x36   : > { %p648_p10 = pneg %p980_p9 }
  0x38   : > { %p988_p11 = pnand %p1159_p8, %p648_p10 }
  0x3a   : > { %s745_s30 = scalar_lea.hbm %s1175_s3, 896  ;;  %p747_p13 = pneg %p988_p11 }
  0x3b   : > { %p746_p12 = scmp.ne.s32.totalorder %s1175_s3, %s745_s30  ;;  %p752_p2 = scmp.lt.u32.totalorder %s745_s30, %s1175_s3 }
  0x3d   : > { %p748_p0 = pnand %p747_p13, %p746_p12 }
  0x3f   : > { %p749_p1 = pneg %p748_p0 }
  0x41   : > { %p754_p3 = pnand %p752_p2, %p749_p1 }
  0x43   : > { %757 = shalt.err (!%p754_p3)
}
  0x44   : > { %s758_s10 = scalar_lea.vmem %s118_s24, 896  ;;  %p766_p8 = scmp.lt.s32.totalorder %s118_s24, %s118_s24 }
  0x45   : > { %p759_p6 = scmp.ne.s32.totalorder %s118_s24, %s758_s10  ;;  %p767_p5 = scmp.lt.s32.totalorder %s758_s10, %s758_s10 }
  0x47   : > { %p761_p7 = pnand %p759_p6, %p747_p13  ;;  %p768_p4 = por %p767_p5, %p766_p8 }
  0x49   : > { %p762_p10 = pneg %p761_p7 }
  0x4b   : > { %p769_p9 = pnand %p768_p4, %p762_p10 }
  0x4d   : > { %772 = shalt.err (!%p769_p9)
}
  0x4e   : > { %s880_s0 = smov 128   ;;  %s881_s1 = smov 8  }
  0x4f   : > { %651 = dma.hbm_to_vmem [thread:$0]  (!%p988_p11), %s1175_s3, 896, %s118_s24, [#allocation10], %s880_s0, %s880_s0, %s881_s1  }
  0x50   : > { %s1176_s4 = sld [smem:[#allocation21_spill]] }
  0x56   : > { %s773_s26 = scalar_lea.hbm %s1176_s4, 896 }
  0x57   : > { %p774_p12 = scmp.ne.s32.totalorder %s1176_s4, %s773_s26  ;;  %p780_p8 = scmp.lt.u32.totalorder %s773_s26, %s1176_s4 }
  0x59   : > { %p776_p4 = pnand %p774_p12, %p747_p13 }
  0x5b   : > { %p777_p5 = pneg %p776_p4 }
  0x5d   : > { %p782_p9 = pnand %p780_p8, %p777_p5 }
  0x5f   : > { %785 = shalt.err (!%p782_p9)
}
  0x60   : > { %s786_s24 = scalar_lea.vmem %s992_s27, 896  ;;  %p794_p3 = scmp.lt.s32.totalorder %s992_s27, %s992_s27 }
  0x61   : > { %p787_p0 = scmp.ne.s32.totalorder %s992_s27, %s786_s24  ;;  %p795_p6 = scmp.lt.s32.totalorder %s786_s24, %s786_s24 }
  0x63   : > { %p789_p1 = pnand %p787_p0, %p747_p13  ;;  %p796_p7 = por %p795_p6, %p794_p3 }
  0x65   : > { %p790_p2 = pneg %p789_p1 }
  0x67   : > { %p797_p10 = pnand %p796_p7, %p790_p2 }
  0x69   : > { %800 = shalt.err (!%p797_p10)
}
  0x6a   : > { %654 = dma.hbm_to_vmem [thread:$0]  (!%p988_p11), %s1176_s4, 896, %s992_s27, [#allocation13], %s880_s0, %s880_s0, %s881_s1  }
  0x6b   : > { %p1177_p12 = scmp.ne.s32.totalorder %s1173_s22, 0 }
  0x6c   : > { %p1178_p4 = scmp.eq.s32.totalorder (!%p1177_p12), %s952_s14, 0 }
  0x6d   : > { %146 = sbr.rel (%p1177_p12) target bundleno = 608 (0x260), region = 28 }
  0x74   : > { %848 = dma.done.wait (%p1178_p4), [#allocation10], 896   ;;  %p1179_p13 = pmov %p1178_p4 }
  0x75   : > { %p1180_p5 = pmov %p1178_p4 }
  0x76   : > { %850 = vsyncadd (%p1179_p13), [#allocation10], 4294966400 }
  0x77   : > { %852 = dma.done.wait (%p1180_p5), [#allocation13], 896   ;;  %p1181_p8 = pmov %p1178_p4 }
  0x78   : > { %s1052_s25 = sshll.u32 %s952_s14, 3  ;;  %s1055_s22 = sshll.u32 %s952_s14, 5  ;;  %vm450_vm3 = vcmask 7168  }
  0x79   : > { %854 = vsyncadd (%p1181_p8), [#allocation13], 4294966400  ;;  %s168_s27 = sld [smem:[#allocation6 + %s1052_s25]]  ;;  %s180_s10 = sadd.s32 1, %s1055_s22 }
  0x7a   : > { %s177_s9 = sld [smem:[#allocation8 + %s1055_s22]]  ;;  %s185_s0 = sadd.s32 2, %s1055_s22 }
  0x7b   : > { %s181_s1 = sld [smem:[#allocation8 + %s180_s10]]  ;;  %s190_s17 = sadd.s32 3, %s1055_s22 }
  0x7c   : > { %s186_s15 = sld [smem:[#allocation8 + %s185_s0]]  ;;  %s1162_s18 = sadd.s32 1, %s1052_s25 }
  0x7d   : > { %s191_s23 = sld [smem:[#allocation8 + %s190_s17]]  ;;  %s616_s28 = sadd.s32 4, %s1055_s22 }
  0x7e   : > { %s197_s26 = sld [smem:[#allocation6 + %s1162_s18]]  ;;  %s1163_s29 = sadd.s32 2, %s1052_s25 }
  0x7f   : > { %s169_s30 = scalar_lea.vmem [#allocation9], %s168_s27  ;;  %s206_s24 = sld [smem:[#allocation8 + %s616_s28]] }
  0x80   : > { %v170_v0 = vld [vmem:[%s169_s30] sm:$0x1]  ;;  %s178_s6 = scalar_lea.vmem [#allocation12], %s177_s9  ;;  %s209_s7 = sadd.s32 1, %s616_s28 }
  0x81   : > { %v179_v1 = vld [vmem:[%s178_s6] sm:$0x1]  ;;  %171 = vst [vmem:[#allocation2] sm:$0x1] %v170_v0  ;;  %s182_s8 = scalar_lea.vmem [#allocation12], %s181_s1  ;;  %s210_s0 = sld [smem:[#allocation8 + %s209_s7]] }
  0x82   : > { %v183_v2 = vld [vmem:[%s182_s8] sm:$0x1]  ;;  %s187_s10 = scalar_lea.vmem [#allocation12], %s186_s15  ;;  %s214_s3 = sadd.s32 2, %s616_s28 }
  0x83   : > { %v188_v3 = vld [vmem:[%s187_s10] sm:$0x1]  ;;  %v184_v4 = vadd.f32 %v183_v2, %v179_v1  ;;  %s192_s17 = scalar_lea.vmem [#allocation12], %s191_s23  ;;  %s215_s27 = sld [smem:[#allocation8 + %s214_s3]] }
  0x84   : > { %v193_v5 = vld [vmem:[%s192_s17] sm:$0x1]  ;;  %s198_s18 = scalar_lea.vmem [#allocation9], %s197_s26  ;;  %s219_s30 = sadd.s32 3, %s616_s28 }
  0x85   : > { %v199_v6 = vld [vmem:[%s198_s18] sm:$0x1]  ;;  %v189_v7 = vadd.f32 %v188_v3, %v184_v4  ;;  %s220_s9 = sld [smem:[#allocation8 + %s219_s30]]  ;;  %s618_s1 = sadd.s32 8, %s1055_s22 }
  0x86   : > { %200 = vst [vmem:[#allocation2 + $0x1] sm:$0x1] %v199_v6  ;;  %s226_s6 = sld [smem:[#allocation6 + %s1163_s29]]  ;;  %s207_s8 = scalar_lea.vmem [#allocation12], %s206_s24 }
  0x87   : > { %v194_v8 = vadd.f32 %v193_v5, %v189_v7  ;;  %v208_v9 = vld [vmem:[%s207_s8] sm:$0x1]  ;;  %s235_s15 = sld [smem:[#allocation8 + %s618_s1]]  ;;  %s238_s10 = sadd.s32 1, %s618_s1 }
  0x88   : > { %s239_s7 = sld [smem:[#allocation8 + %s238_s10]]  ;;  %s211_s23 = scalar_lea.vmem [#allocation12], %s210_s0 }
  0x89   : > { %195 = vst [vmem:[#allocation4] sm:$0x1] %v194_v8  ;;  %v212_v10 = vld [vmem:[%s211_s23] sm:$0x1]  ;;  %s243_s18 = sadd.s32 2, %s618_s1  ;;  %s248_s3 = sadd.s32 3, %s618_s1 }
  0x8a   : > { %v213_v11 = vadd.f32 %v212_v10, %v208_v9  ;;  %s244_s26 = sld [smem:[#allocation8 + %s243_s18]]  ;;  %s216_s28 = scalar_lea.vmem [#allocation12], %s215_s27 }
  0x8b   : > { %v217_v12 = vld [vmem:[%s216_s28] sm:$0x1]  ;;  %s221_s17 = scalar_lea.vmem [#allocation12], %s220_s9  ;;  %s249_s30 = sld [smem:[#allocation8 + %s248_s3]] }
  0x8c   : > { %v218_v13 = vadd.f32 %v217_v12, %v213_v11  ;;  %v222_v14 = vld [vmem:[%s221_s17] sm:$0x1]  ;;  %s227_s24 = scalar_lea.vmem [#allocation9], %s226_s6  ;;  %s1165_s8 = sadd.s32 3, %s1052_s25 }
  0x8d   : > { %v228_v15 = vld [vmem:[%s227_s24] sm:$0x1]  ;;  %s255_s10 = sld [smem:[#allocation6 + %s1165_s8]]  ;;  %s236_s0 = scalar_lea.vmem [#allocation12], %s235_s15 }
  0x8e   : > { %229 = vst [vmem:[#allocation2 + $0x2] sm:$0x1] %v228_v15  ;;  %v223_v16 = vadd.f32 %v222_v14, %v218_v13  ;;  %v237_v17 = vld [vmem:[%s236_s0] sm:$0x1]  ;;  %s620_s23 = sadd.s32 12, %s1055_s22  ;;  %s240_s1 = scalar_lea.vmem [#allocation12], %s239_s7 }
  0x8f   : > { %v241_v18 = vld [vmem:[%s240_s1] sm:$0x1]  ;;  %s264_s29 = sld [smem:[#allocation8 + %s620_s23]]  ;;  %s267_s18 = sadd.s32 1, %s620_s23 }
  0x90   : > { %224 = vst [vmem:[#allocation4 + $0x1] sm:$0x1] %v223_v16  ;;  %v242_v19 = vadd.f32 %v241_v18, %v237_v17  ;;  %s268_s27 = sld [smem:[#allocation8 + %s267_s18]]  ;;  %s245_s9 = scalar_lea.vmem [#allocation12], %s244_s26 }
  0x91   : > { %v246_v20 = vld [vmem:[%s245_s9] sm:$0x1]  ;;  %s272_s6 = sadd.s32 2, %s620_s23  ;;  %s277_s3 = sadd.s32 3, %s620_s23 }
  0x92   : > { %v247_v21 = vadd.f32 %v246_v20, %v242_v19  ;;  %s273_s28 = sld [smem:[#allocation8 + %s272_s6]]  ;;  %s250_s17 = scalar_lea.vmem [#allocation12], %s249_s30 }
  0x93   : > { %v251_v22 = vld [vmem:[%s250_s17] sm:$0x1]  ;;  %s278_s15 = sld [smem:[#allocation8 + %s277_s3]]  ;;  %s256_s7 = scalar_lea.vmem [#allocation9], %s255_s10 }
  0x94   : > { %v252_v23 = vadd.f32 %v251_v22, %v247_v21  ;;  %v257_v24 = vld [vmem:[%s256_s7] sm:$0x1]  ;;  %s1164_s24 = sadd.s32 4, %s1052_s25  ;;  %s622_s0 = sadd.s32 16, %s1055_s22 }
  0x95   : > { %258 = vst [vmem:[#allocation2 + $0x3] sm:$0x1] %v257_v24  ;;  %s284_s1 = sld [smem:[#allocation6 + %s1164_s24]]  ;;  %s265_s18 = scalar_lea.vmem [#allocation12], %s264_s29 }
  0x96   : > { %253 = vst [vmem:[#allocation4 + $0x2] sm:$0x1] %v252_v23  ;;  %v266_v25 = vld [vmem:[%s265_s18] sm:$0x1]  ;;  %s293_s26 = sld [smem:[#allocation8 + %s622_s0]]  ;;  %s269_s9 = scalar_lea.vmem [#allocation12], %s268_s27 }
  0x97   : > { %v270_v26 = vld [vmem:[%s269_s9] sm:$0x1]  ;;  %s296_s23 = sadd.s32 1, %s622_s0  ;;  %s301_s30 = sadd.s32 2, %s622_s0 }
  0x98   : > { %v271_v27 = vadd.f32 %v270_v26, %v266_v25  ;;  %s297_s6 = sld [smem:[#allocation8 + %s296_s23]]  ;;  %s274_s3 = scalar_lea.vmem [#allocation12], %s273_s28 }
  0x99   : > { %v275_v28 = vld [vmem:[%s274_s3] sm:$0x1]  ;;  %s302_s10 = sld [smem:[#allocation8 + %s301_s30]]  ;;  %s279_s17 = scalar_lea.vmem [#allocation12], %s278_s15 }
  0x9a   : > { %v276_v29 = vadd.f32 %v275_v28, %v271_v27  ;;  %v280_v30 = vld [vmem:[%s279_s17] sm:$0x1]  ;;  %s306_s7 = sadd.s32 3, %s622_s0  ;;  %s1166_s29 = sadd.s32 5, %s1052_s25 }
  0x9b   : > { %s307_s24 = sld [smem:[#allocation8 + %s306_s7]]  ;;  %s285_s18 = scalar_lea.vmem [#allocation9], %s284_s1 }
  0x9c   : > { %v281_v31 = vadd.f32 %v280_v30, %v276_v29  ;;  %v286_v32 = vld [vmem:[%s285_s18] sm:$0x1]  ;;  %s313_s27 = sld [smem:[#allocation6 + %s1166_s29]]  ;;  %s294_s9 = scalar_lea.vmem [#allocation12], %s293_s26  ;;  %v444_v29 = vlaneseq }
  0x9d   : > { %287 = vst [vmem:[#allocation2 + $0x4] sm:$0x1] %v286_v32  ;;  %v295_v33 = vld [vmem:[%s294_s9] sm:$0x1]  ;;  %s624_s23 = sadd.s32 20, %s1055_s22  ;;  %s341_s28 = sadd.s32 6, %s1052_s25 }
  0x9e   : > { %282 = vst [vmem:[#allocation4 + $0x3] sm:$0x1] %v281_v31  ;;  %s322_s3 = sld [smem:[#allocation8 + %s624_s23]]  ;;  %s298_s8 = scalar_lea.vmem [#allocation12], %s297_s6 }
  0x9f   : > { %v299_v34 = vld [vmem:[%s298_s8] sm:$0x1]  ;;  %s325_s15 = sadd.s32 1, %s624_s23  ;;  %s303_s0 = scalar_lea.vmem [#allocation12], %s302_s10 }
  0xa0   : > { %v300_v35 = vadd.f32 %v299_v34, %v295_v33  ;;  %v304_v36 = vld [vmem:[%s303_s0] sm:$0x1]  ;;  %s326_s30 = sld [smem:[#allocation8 + %s325_s15]]  ;;  %s330_s1 = sadd.s32 2, %s624_s23 }
  0xa1   : > { %s331_s17 = sld [smem:[#allocation8 + %s330_s1]]  ;;  %s308_s7 = scalar_lea.vmem [#allocation12], %s307_s24 }
  0xa2   : > { %v305_v37 = vadd.f32 %v304_v36, %v300_v35  ;;  %v309_v38 = vld [vmem:[%s308_s7] sm:$0x1]  ;;  %s335_s26 = sadd.s32 3, %s624_s23  ;;  %s314_s18 = scalar_lea.vmem [#allocation9], %s313_s27 }
  0xa3   : > { %v315_v39 = vld [vmem:[%s314_s18] sm:$0x1]  ;;  %s336_s9 = sld [smem:[#allocation8 + %s335_s26]]  ;;  %s626_s8 = sadd.s32 24, %s1055_s22 }
  0xa4   : > { %s342_s29 = sld [smem:[#allocation6 + %s341_s28]]  ;;  %v310_v40 = vadd.f32 %v309_v38, %v305_v37  ;;  %316 = vst [vmem:[#allocation2 + $0x5] sm:$0x1] %v315_v39  ;;  %s323_s6 = scalar_lea.vmem [#allocation12], %s322_s3  ;;  %v445_v38 = vshrl.u32 %v444_v29, 7 }
  0xa5   : > { %v324_v41 = vld [vmem:[%s323_s6] sm:$0x1]  ;;  %s351_s4 = sld [smem:[#allocation8 + %s626_s8]]  ;;  %s354_s10 = sadd.s32 1, %s626_s8 }
  0xa6   : > { %311 = vst [vmem:[#allocation4 + $0x4] sm:$0x1] %v310_v40  ;;  %s355_s15 = sld [smem:[#allocation8 + %s354_s10]]  ;;  %s327_s0 = scalar_lea.vmem [#allocation12], %s326_s30 }
  0xa7   : > { %v328_v42 = vld [vmem:[%s327_s0] sm:$0x1]  ;;  %s359_s24 = sadd.s32 2, %s626_s8  ;;  %s332_s27 = scalar_lea.vmem [#allocation12], %s331_s17 }
  0xa8   : > { %v329_v43 = vadd.f32 %v328_v42, %v324_v41  ;;  %v333_v44 = vld [vmem:[%s332_s27] sm:$0x1]  ;;  %s360_s23 = sld [smem:[#allocation8 + %s359_s24]]  ;;  %s364_s1 = sadd.s32 3, %s626_s8  ;;  %v446_v41 = vstv %s1052_s25 }
  0xa9   : > { %s337_s7 = scalar_lea.vmem [#allocation12], %s336_s9  ;;  %s365_s26 = sld [smem:[#allocation8 + %s364_s1]] }
  0xaa   : > { %v334_v45 = vadd.f32 %v333_v44, %v329_v43  ;;  %v338_v46 = vld [vmem:[%s337_s7] sm:$0x1]  ;;  %s343_s3 = scalar_lea.vmem [#allocation9], %s342_s29  ;;  %s1167_s18 = sadd.s32 7, %s1052_s25 }
  0xab   : > { %v344_v47 = vld [vmem:[%s343_s3] sm:$0x1]  ;;  %s371_s6 = sld [smem:[#allocation6 + %s1167_s18]]  ;;  %s352_s30 = scalar_lea.vmem [#allocation12], %s351_s4 }
  0xac   : > { %345 = vst [vmem:[#allocation2 + $0x6] sm:$0x1] %v344_v47  ;;  %v339_v48 = vadd.f32 %v338_v46, %v334_v45  ;;  %v353_v49 = vld [vmem:[%s352_s30] sm:$0x1]  ;;  %s628_s10 = sadd.s32 28, %s1055_s22  ;;  %s356_s0 = scalar_lea.vmem [#allocation12], %s355_s15 }
  0xad   : > { %v357_v50 = vld [vmem:[%s356_s0] sm:$0x1]  ;;  %s380_s17 = sld [smem:[#allocation8 + %s628_s10]]  ;;  %s383_s27 = sadd.s32 1, %s628_s10 }
  0xae   : > { %340 = vst [vmem:[#allocation4 + $0x5] sm:$0x1] %v339_v48  ;;  %v358_v51 = vadd.f32 %v357_v50, %v353_v49  ;;  %s384_s9 = sld [smem:[#allocation8 + %s383_s27]]  ;;  %s361_s29 = scalar_lea.vmem [#allocation12], %s360_s23  ;;  %v447_v48 = vadd.s32 %v446_v41, %v445_v38 }
  0xaf   : > { %v362_v52 = vld [vmem:[%s361_s29] sm:$0x1]  ;;  %s388_s8 = sadd.s32 2, %s628_s10  ;;  %s393_s24 = sadd.s32 3, %s628_s10 }
  0xb0   : > { %v363_v53 = vadd.f32 %v362_v52, %v358_v51  ;;  %s389_s1 = sld [smem:[#allocation8 + %s388_s8]]  ;;  %s366_s4 = scalar_lea.vmem [#allocation12], %s365_s26  ;;  %vm448_vm2 = vcmp.lt.s32.totalorder %v447_v48, 20 }
  0xb1   : > { %v367_v54 = vld [vmem:[%s366_s4] sm:$0x1]  ;;  %s394_s22 = sld [smem:[#allocation8 + %s393_s24]]  ;;  %s372_s15 = scalar_lea.vmem [#allocation9], %s371_s6 }
  0xb2   : > { %v368_v55 = vadd.f32 %v367_v54, %v363_v53  ;;  %v373_v56 = vld [vmem:[%s372_s15] sm:$0x1]  ;;  %s172_s7 = sld [smem:[#allocation7 + %s1052_s25]]  ;;  %s1182_s3 = sadd.s32 1, %s1052_s25 }
  0xb3   : > { %s201_s30 = sld [smem:[#allocation7 + %s1182_s3]]  ;;  %374 = vst [vmem:[#allocation2 + $0x7] sm:$0x1] %v373_v56  ;;  %s1183_s23 = sadd.s32 2, %s1052_s25 }
  0xb4   : > { %s230_s0 = sld [smem:[#allocation7 + %s1183_s23]]  ;;  %369 = vst [vmem:[#allocation4 + $0x6] sm:$0x1] %v368_v55  ;;  %s381_s10 = scalar_lea.vmem [#allocation12], %s380_s17 }
  0xb5   : > { %v382_v57 = vld [vmem:[%s381_s10] sm:$0x1]  ;;  %s1184_s27 = sadd.s32 3, %s1052_s25  ;;  %s385_s29 = scalar_lea.vmem [#allocation12], %s384_s9 }
  0xb6   : > { %s259_s26 = sld [smem:[#allocation7 + %s1184_s27]]  ;;  %v386_v58 = vld [vmem:[%s385_s29] sm:$0x1]  ;;  %s1185_s8 = sadd.s32 4, %s1052_s25 }
  0xb7   : > { %s288_s24 = sld [smem:[#allocation7 + %s1185_s8]]  ;;  %s1186_s4 = sadd.s32 5, %s1052_s25  ;;  %v387_v59 = vadd.f32 %v386_v58, %v382_v57 }
  0xb8   : > { %s317_s18 = sld [smem:[#allocation7 + %s1186_s4]]  ;;  %s390_s15 = scalar_lea.vmem [#allocation12], %s389_s1 }
  0xb9   : > { %s346_s6 = sld [smem:[#allocation7 + %s341_s28]]  ;;  %v391_v60 = vld [vmem:[%s390_s15] sm:$0x1]  ;;  %s1187_s3 = sadd.s32 7, %s1052_s25 }
  0xba   : > { %s375_s19 = sld [smem:[#allocation7 + %s1187_s3]]  ;;  %v392_v61 = vadd.f32 %v391_v60, %v387_v59  ;;  %s395_s23 = scalar_lea.vmem [#allocation12], %s394_s22  ;;  %v399_v8 = vld [vmem:[#allocation2] sm:$0xff] }
  0xbb   : > { %v396_v62 = vld [vmem:[%s395_s23] sm:$0x1]  ;;  %s173_s17 = scalar_lea.vmem [#allocation12], %s172_s7  ;;  %s202_s10 = scalar_lea.vmem [#allocation12], %s201_s30 }
  0xbc   : > { %v174_v63 = vld [vmem:[%s173_s17] sm:$0x1]  ;;  %v397_v1 = vadd.f32 %v396_v62, %v392_v61  ;;  %s231_s9 = scalar_lea.vmem [#allocation12], %s230_s0  ;;  %s260_s27 = scalar_lea.vmem [#allocation12], %s259_s26 }
  0xbd   : > { %v203_v0 = vld [vmem:[%s202_s10] sm:$0x1]  ;;  %175 = vst [vmem:[#allocation3] sm:$0x1] %v174_v63  ;;  %s289_s28 = scalar_lea.vmem [#allocation12], %s288_s24  ;;  %s612_s0 = sshll.u32 %s952_s14, 7 }
  0xbe   : > { %204 = vst [vmem:[#allocation3 + $0x1] sm:$0x1] %v203_v0  ;;  %v232_v2 = vld [vmem:[%s231_s9] sm:$0x1]  ;;  %398 = vst [vmem:[#allocation4 + $0x7] sm:$0x1] %v397_v1  ;;  %s1113_s24 = scalar_lea.hbm %s1156_s5, %s612_s0 }
  0xbf   : > { %233 = vst [vmem:[#allocation3 + $0x2] sm:$0x1] %v232_v2  ;;  %v261_v3 = vld [vmem:[%s260_s27] sm:$0x1]  ;;  %s318_s1 = scalar_lea.vmem [#allocation12], %s317_s18  ;;  %s347_s22 = scalar_lea.vmem [#allocation12], %s346_s6 }
  0xc0   : > { %262 = vst [vmem:[#allocation3 + $0x3] sm:$0x1] %v261_v3  ;;  %v290_v4 = vld [vmem:[%s289_s28] sm:$0x1]  ;;  %s376_s7 = scalar_lea.vmem [#allocation12], %s375_s19  ;;  %s164_s19 = sand.u32 1, %s865_s11  }
  0xc1   : > { %v319_v5 = vld [vmem:[%s318_s1] sm:$0x1]  ;;  %291 = vst [vmem:[#allocation3 + $0x4] sm:$0x1] %v290_v4  ;;  %s601_s25 = sshll.u32 %s164_s19, 3  ;;  %s464_s4 = scalar_lea.sflag [#allocation11], %s164_s19 }
  0xc2   : > { %320 = vst [vmem:[#allocation3 + $0x5] sm:$0x1] %v319_v5  ;;  %v348_v6 = vld [vmem:[%s347_s22] sm:$0x1]  ;;  %s166_s18 = scalar_lea.vmem [#allocation14], %s601_s25  ;;  %p1188_p9 = scmp.ne.s32.totalorder %s1171_s20, 0 }
  0xc3   : > { %349 = vst [vmem:[#allocation3 + $0x6] sm:$0x1] %v348_v6  ;;  %v377_v7 = vld [vmem:[%s376_s7] sm:$0x1]  ;;  %s477_s30 = sshll.u32 %s166_s18, 4  ;;  %s882_s14 = smov [#allocation14]   ;;  %s1108_s30 = int_to_ptr.vmem [resolvable:$true] %s477_s30 }
  0xc4   : > { %378 = vst [vmem:[#allocation3 + $0x7] sm:$0x1] %v377_v7  ;;  %s801_s6 = scalar_lea.vmem %s1108_s30, 128  ;;  %s805_s15 = sshll.u32 %s882_s14, 4  ;;  %s806_s15 = int_to_ptr.vmem [resolvable:$false] %s805_s15 }
  0xc5   : > { %v404_v9 = vld [vmem:[#allocation4] sm:$0xff]  ;;  %p802_p11 = scmp.ne.s32.totalorder %s1108_s30, %s801_s6  ;;  %s807_s3 = scalar_lea.vmem %s806_s15, 256 }
  0xc6   : > { %v405_v10 = vmul.f32 %v404_v9, %v399_v8  ;;  %p808_p2 = scmp.lt.s32.totalorder %s1108_s30, %s806_s15  ;;  %p809_p3 = scmp.lt.s32.totalorder %s807_s3, %s801_s6 }
  0xc7   : > { %p803_p0 = pnand %p802_p11, %p1188_p9 }
  0xc8   : > { %406 = vadd.xlane.f32.xlu0 %v405_v10  ;;  %p810_p6 = por %p809_p3, %p808_p2 }
  0xc9   : > { %p804_p1 = pneg %p803_p0 }
  0xcb   : > { %v400_v11 = vld [vmem:[#allocation3] sm:$0xff]  ;;  %p811_p7 = pnand %p810_p6, %p804_p1 }
  0xcc   : > { %v401_v12 = vmul.f32 %v400_v11, %v399_v8 }
  0xce   : > { %402 = vadd.xlane.f32.xlu0 %v401_v12 }
 0x155   : > { %v407_v13 = vpop.xlane.xlu0 %406 }
 0x156   : > { %v408_v14 = vsub.f32 0.0, %v407_v13 }
 0x158   : > { %v428_v15 = vand.u32 2147483647, %v408_v14  ;;  %v426_v30 = vsub.f32 0.0, %v408_v14 }
 0x15a   : > { %v429_v17 = vsub.f32 0.0, %v428_v15  ;;  %v427_v40 = vmax.f32 %v426_v30, 0.0 }
 0x15b   : > { %v403_v16 = vpop.xlane.xlu0 %402 }
 0x15c   : > { %v411_v18 = vand.u32 2147483647, %v403_v16  ;;  %v430_v19 = vmul.f32 1.442695, %v429_v17  ;;  %v409_v34 = vsub.f32 0.0, %v403_v16 }
 0x15e   : > { %v412_v20 = vsub.f32 0.0, %v411_v18  ;;  %703 = vpow2.f32 %v430_v19  ;;  %v410_v46 = vmax.f32 %v409_v34, 0.0 }
 0x160   : > { %v413_v21 = vmul.f32 1.442695, %v412_v20 }
 0x162   : > { %705 = vpow2.f32 %v413_v21 }
 0x168   : > { %v704_v22 = vpop.eup %703 }
 0x169   : > { %v432_v23 = vadd.f32 1.0, %v704_v22  ;;  %v435_v26 = vmul.f32 -0.5, %v704_v22  ;;  %v438_v31 = vand.u32 2147483647, %v704_v22 }
 0x16b   : > { %707 = vlog2.f32 %v432_v23  ;;  %v436_v28 = vadd.f32 1.0, %v435_v26  ;;  %vm439_vm0 = vcmp.lt.f32.partialorder %v438_v31, 0.0004427343 }
 0x16c   : > { %v706_v24 = vpop.eup %705 }
 0x16d   : > { %v415_v25 = vadd.f32 1.0, %v706_v24  ;;  %v418_v27 = vmul.f32 -0.5, %v706_v24  ;;  %v421_v35 = vand.u32 2147483647, %v706_v24  ;;  %v437_v37 = vmul.f32 %v704_v22, %v436_v28 }
 0x16f   : > { %709 = vlog2.f32 %v415_v25  ;;  %v419_v32 = vadd.f32 1.0, %v418_v27  ;;  %vm422_vm1 = vcmp.lt.f32.partialorder %v421_v35, 0.0004427343 }
 0x171   : > { %v420_v44 = vmul.f32 %v706_v24, %v419_v32 }
 0x175   : > { %v708_v33 = vpop.eup %707 }
 0x176   : > { %v434_v36 = vmul.f32 0.6931472, %v708_v33 }
 0x178   : > { %v440_v42 = vsel %vm439_vm0, %v437_v37, %v434_v36 }
 0x179   : > { %v710_v39 = vpop.eup %709  ;;  %v441_v45 = vadd.f32 %v440_v42, %v427_v40 }
 0x17a   : > { %v417_v43 = vmul.f32 0.6931472, %v710_v39 }
 0x17b   : > { %v442_v51 = vsub.f32 0.0, %v441_v45 }
 0x17c   : > { %v423_v47 = vsel %vm422_vm1, %v420_v44, %v417_v43 }
 0x17d   : > { %v424_v49 = vadd.f32 %v423_v47, %v410_v46 }
 0x17f   : > { %v425_v50 = vsub.f32 0.0, %v424_v49 }
 0x181   : > { %v443_v52 = vadd.f32 %v442_v51, %v425_v50 }
 0x183   : > { %v449_v53 = vsel %vm448_vm2, %v443_v52, 0.0 }
 0x184   : > { %v451_v54 = vsel %vm450_vm3, %v449_v53, 0.0 }
 0x185   : > { %452 = vadd.xlane.f32.xlu1 %v451_v54 }
 0x212   : > { %v453_v55 = vpop.xlane.xlu1 %452 }
 0x213   : > { %v454_v56 = vrot.slane %v453_v55, 4 }
 0x215   : > { %v455_v57 = vadd.f32 %v454_v56, %v453_v55 }
 0x217   : > { %v456_v58 = vrot.slane %v455_v57, 2 }
 0x219   : > { %v457_v59 = vadd.f32 %v456_v58, %v455_v57 }
 0x21b   : > { %v458_v60 = vrot.slane %v457_v59, 1 }
 0x21d   : > { %v459_v61 = vadd.f32 %v458_v60, %v457_v59 }
 0x21f   : > { %636 = vpush %v459_v61 }
 0x250   : > { %s637_s26 = spop %636 }
 0x251   : > { %v461_v62 = vstv %s637_s26 }
 0x252   : > { %462 = vst [vmem:[%s166_s18] sm:$0xff] %v461_v62 }
 0x253   : > { %814 = shalt.err (!%p811_p7)
}
 0x254   : > { %s815_s23 = scalar_lea.hbm %s1113_s24, 128  ;;  %s819_s9 = scalar_lea.hbm %s1156_s5, 384 }
 0x255   : > { %p816_p10 = scmp.ne.s32.totalorder %s1113_s24, %s815_s23  ;;  %p820_p13 = scmp.lt.u32.totalorder %s1113_s24, %s1156_s5 }
 0x256   : > { %p821_p5 = scmp.lt.u32.totalorder %s819_s9, %s815_s23  ;;  %p823_p11 = scmp.lt.u32.totalorder %s815_s23, %s1113_s24 }
 0x257   : > { %p817_p12 = pnand %p816_p10, %p1188_p9 }
 0x258   : > { %p822_p8 = por %p821_p5, %p820_p13 }
 0x259   : > { %p818_p4 = pneg %p817_p12 }
 0x25a   : > { %p824_p0 = por %p823_p11, %p822_p8 }
 0x25c   : > { %p825_p1 = pnand %p824_p0, %p818_p4 }
 0x25e   : > { %828 = shalt.err (!%p825_p1)
}
 0x25f   : > { %646 = dma.vmem_to_hbm [thread:$0]  (%p1188_p9), %s1108_s30, 128, %s1113_s24, %s464_s4  }
 0x260 PF: > { %p663_p2 = scmp.ge.s32.totalorder %s873_s13, 2  ;;  %s489_s1 = sand.u32 1, %s861_s2  }
 0x261   : > { %p1189_p3 = scmp.ne.s32.totalorder %s1172_s21, 0  ;;  %s490_s22 = scalar_lea.sflag [#allocation11], %s489_s1 }
 0x263   : > { %p656_p6 = pnand %p663_p2, %p1189_p3 }
 0x265   : > { %856 = dma.done.wait (!%p656_p6), %s490_s22, 128  }
 0x266   : > { %858 = vsyncadd (!%p656_p6), %s490_s22, 4294967168  ;;  %s1190_s7 = sld [smem:[#allocation19_spill]]  ;;  %p29_p7 = scmp.ge.s32.totalorder %s956_s16, 5  }
 0x267   : > { %s1191_s2 = smov %s865_s11  ;;  %s1192_s11 = smov %s869_s12 }
 0x268   : > { %s1194_s13 = smov %s956_s16  ;;  %31 = sbr.rel (!%p29_p7) target bundleno = 39 (0x27), region = 117 }
 0x26c   : > { %s1193_s12 = smov %s1190_s7 }
 0x26f   :  { %495 = vsyncpa [#allocation10], 1 }
 0x270   :  { %497 = vsyncpa [#allocation10 + $0x1], 1 }
 0x271   :  { %498 = vsyncpa [#allocation13], 1 }
 0x272   :  { %499 = vsyncpa [#allocation11], 1 }
 0x273   :  { %501 = vsyncpa [#allocation11 + $0x1], 1 }

</bundles_post_ra>
